<compile_context>
chip_gen: v6e
topology: v6e:2x2x1
jax: 0.10.0
libtpu: 0.0.40
codegen_flags: <defaults>
</compile_context>

<pallas_src>
import math

import jax
import jax.numpy as jnp
from jax.experimental import pallas as pl
from jax.experimental.pallas import tpu as pltpu

HIDDEN_SIZES = [128, 64]
NUM_LAYERS = 3
PAD = 128  # every feature dim (n_obs, hidden1, hidden2, n_actions) zero-padded to 128

# pltpu.CompilerParams on recent jax; fall back for older releases so the script always runs.
_CompilerParams = getattr(pltpu, "CompilerParams", None) or getattr(pltpu, "TPUCompilerParams")


def dqln_kernel(x_ref, w_ref, b_ref, out_ref):
    """x_ref: (TB, 128) bf16, w_ref: (3, 128, 128) bf16, b_ref: (3, 128) f32,
    out_ref: (TB, 128) f32.  All matmuls are bf16 x bf16 on the MXU with f32 accumulation."""
    h = x_ref[...]
    # layer 1 + ReLU
    h = jnp.dot(h, w_ref[0], preferred_element_type=jnp.float32) + b_ref[0]
    h = jnp.maximum(h, 0.0).astype(jnp.bfloat16)
    # layer 2 + ReLU (padded columns stay exactly zero: zero weights + zero bias + relu)
    h = jnp.dot(h, w_ref[1], preferred_element_type=jnp.float32) + b_ref[1]
    h = jnp.maximum(h, 0.0).astype(jnp.bfloat16)
    # layer 3 (no activation)
    h = jnp.dot(h, w_ref[2], preferred_element_type=jnp.float32) + b_ref[2]
    out_ref[...] = h.astype(out_ref.dtype)


def dqln_forward(x, packed_params, n_actions, *, block_b=512):
    """x: (B, n_observations) f32 -> (B, n_actions) f32."""
    w_all, b_all = packed_params
    B, n_obs = x.shape
    tb = block_b
    b_pad = -(-B // tb) * tb  # round batch up to a multiple of the batch tile

    # Zero-pad batch and observation dims, cast activations to bf16 for the MXU.
    x_p = jnp.zeros((b_pad, PAD), jnp.bfloat16).at[:B, :n_obs].set(x.astype(jnp.bfloat16))

    out_p = pl.pallas_call(
        dqln_kernel,
        out_shape=jax.ShapeDtypeStruct((b_pad, PAD), jnp.float32),
        grid=(b_pad // tb,),
        in_specs=[
            pl.BlockSpec((tb, PAD), lambda i: (i, 0)),                  # x: streamed per tile
            pl.BlockSpec((NUM_LAYERS, PAD, PAD), lambda i: (0, 0, 0)),  # weights: VMEM-resident
            pl.BlockSpec((NUM_LAYERS, PAD), lambda i: (0, 0)),          # biases:  VMEM-resident
        ],
        out_specs=pl.BlockSpec((tb, PAD), lambda i: (i, 0)),
        compiler_params=_CompilerParams(dimension_semantics=("parallel",)),
    )(x_p, w_all, b_all)

    # drop batch padding and the zero-padded action columns
    return out_p[:B, :n_actions]


def init_dqln_params(key, n_observations, n_actions):
    """PyTorch nn.Linear-style init (uniform(+-1/sqrt(fan_in))), packed into
    a (3, 128, 128) bf16 weight slab (stored as (in, out)) and a (3, 128) f32 bias slab.
    Also returns the raw unpadded f32 (w, b) pairs for the reference check."""
    dims = [n_observations, HIDDEN_SIZES[0], HIDDEN_SIZES[1], n_actions]
    w_all = jnp.zeros((NUM_LAYERS, PAD, PAD), jnp.float32)
    b_all = jnp.zeros((NUM_LAYERS, PAD), jnp.float32)
    raw = []
    for i in range(NUM_LAYERS):
        fan_in, fan_out = dims[i], dims[i + 1]
        bound = 1.0 / math.sqrt(fan_in)
        key, kw, kb = jax.random.split(key, 3)
        w = jax.random.uniform(kw, (fan_in, fan_out), jnp.float32, -bound, bound)
        b = jax.random.uniform(kb, (fan_out,), jnp.float32, -bound, bound)
        w_all = w_all.at[i, :fan_in, :fan_out].set(w)
        b_all = b_all.at[i, :fan_out].set(b)
        raw.append((w, b))
    return (w_all.astype(jnp.bfloat16), b_all), raw


def ref_forward(x, raw_params):
    """Pure-JAX reference mirroring the kernel's bf16-operand / f32-accumulate numerics."""
    h = x
    for i, (w, b) in enumerate(raw_params):
        hb = h.astype(jnp.bfloat16).astype(jnp.float32)
        wb = w.astype(jnp.bfloat16).astype(jnp.float32)
        h = jnp.dot(hb, wb, precision=jax.lax.Precision.HIGHEST) + b
        if i < NUM_LAYERS - 1:
            h = jnp.maximum(h, 0.0)
    return h


if __name__ == "__main__":
    key = jax.random.PRNGKey(0)
    n_observations = 16
    n_actions = 4
    batch = 1024  # two batch tiles of 512 -> exercises the pipelined / parallel grid

    key, kx = jax.random.split(key)
    x = jax.random.normal(kx, (batch, n_observations), jnp.float32)
    packed, raw = init_dqln_params(key, n_observations, n_actions)

    out = dqln_forward(x, packed, n_actions, block_b=512)
    out = jax.block_until_ready(out)

    ref = ref_forward(x, raw)
    assert out.shape == (batch, n_actions)
    assert jnp.allclose(out, ref, atol=1e-3, rtol=1e-3), float(jnp.max(jnp.abs(out - ref)))

    print("KERNEL_OK")
</pallas_src>

<mosaic_0001>
module attributes {stable_mosaic.version = 11 : i64} {
  func.func @dqln_kernel(%arg0: i32, %arg1: memref<512x128xbf16, #tpu.memory_space<vmem>>, %arg2: memref<3x128x128xbf16, #tpu.memory_space<vmem>>, %arg3: memref<3x128xf32, #tpu.memory_space<vmem>>, %arg4: memref<512x128xf32, #tpu.memory_space<vmem>>) attributes {dimension_semantics = [#tpu.dimension_semantics<parallel>], iteration_bounds = array<i64: 2>, scalar_prefetch = 0 : i64, scratch_operands = 0 : i64, tpu.core_type = #tpu.core_type<tc>, window_params = [{transform_indices = @transform_0, window_bounds = array<i64: 512, 128>}, {pipeline_mode = #tpu.pipeline_mode<synchronous>, transform_indices = @transform_1, window_bounds = array<i64: 3, 128, 128>}, {pipeline_mode = #tpu.pipeline_mode<synchronous>, transform_indices = @transform_2, window_bounds = array<i64: 3, 128>}, {transform_indices = @transform_3, window_bounds = array<i64: 512, 128>}]} {
    %c0 = arith.constant 0 : index
    %c0_0 = arith.constant 0 : index
    %0 = vector.load %arg1[%c0, %c0_0] : memref<512x128xbf16, #tpu.memory_space<vmem>>, vector<512x128xbf16>
    %c0_1 = arith.constant 0 : index
    %c0_2 = arith.constant 0 : index
    %c0_3 = arith.constant 0 : index
    %1 = vector.load %arg2[%c0_1, %c0_2, %c0_3] : memref<3x128x128xbf16, #tpu.memory_space<vmem>>, vector<1x128x128xbf16>
    %2 = vector.shape_cast %1 : vector<1x128x128xbf16> to vector<128x128xbf16>
    %cst = arith.constant dense<0.000000e+00> : vector<512x128xf32>
    %3 = tpu.matmul %0, %2, %cst {dimension_numbers = #tpu.dot_dimension_numbers<[1], [0], [0], [1], [0, 0, 1, 1], [], []>} : vector<512x128xbf16>, vector<128x128xbf16>, vector<512x128xf32> -> vector<512x128xf32>
    %c0_4 = arith.constant 0 : index
    %c0_5 = arith.constant 0 : index
    %4 = vector.load %arg3[%c0_4, %c0_5] : memref<3x128xf32, #tpu.memory_space<vmem>>, vector<1x128xf32>
    %5 = vector.shape_cast %4 : vector<1x128xf32> to vector<128xf32>
    %6 = vector.shape_cast %5 : vector<128xf32> to vector<1x128xf32>
    %7 = vector.broadcast %6 : vector<1x128xf32> to vector<512x128xf32>
    %8 = arith.addf %3, %7 : vector<512x128xf32>
    %cst_6 = arith.constant 0.000000e+00 : f32
    %9 = vector.broadcast %cst_6 : f32 to vector<512x128xf32>
    %10 = arith.maximumf %8, %9 : vector<512x128xf32>
    %11 = arith.truncf %10 : vector<512x128xf32> to vector<512x128xbf16>
    %c1 = arith.constant 1 : index
    %c0_7 = arith.constant 0 : index
    %c0_8 = arith.constant 0 : index
    %12 = vector.load %arg2[%c1, %c0_7, %c0_8] : memref<3x128x128xbf16, #tpu.memory_space<vmem>>, vector<1x128x128xbf16>
    %13 = vector.shape_cast %12 : vector<1x128x128xbf16> to vector<128x128xbf16>
    %cst_9 = arith.constant dense<0.000000e+00> : vector<512x128xf32>
    %14 = tpu.matmul %11, %13, %cst_9 {dimension_numbers = #tpu.dot_dimension_numbers<[1], [0], [0], [1], [0, 0, 1, 1], [], []>} : vector<512x128xbf16>, vector<128x128xbf16>, vector<512x128xf32> -> vector<512x128xf32>
    %c1_10 = arith.constant 1 : index
    %c0_11 = arith.constant 0 : index
    %15 = vector.load %arg3[%c1_10, %c0_11] : memref<3x128xf32, #tpu.memory_space<vmem>>, vector<1x128xf32>
    %16 = vector.shape_cast %15 : vector<1x128xf32> to vector<128xf32>
    %17 = vector.shape_cast %16 : vector<128xf32> to vector<1x128xf32>
    %18 = vector.broadcast %17 : vector<1x128xf32> to vector<512x128xf32>
    %19 = arith.addf %14, %18 : vector<512x128xf32>
    %cst_12 = arith.constant 0.000000e+00 : f32
    %20 = vector.broadcast %cst_12 : f32 to vector<512x128xf32>
    %21 = arith.maximumf %19, %20 : vector<512x128xf32>
    %22 = arith.truncf %21 : vector<512x128xf32> to vector<512x128xbf16>
    %c2 = arith.constant 2 : index
    %c0_13 = arith.constant 0 : index
    %c0_14 = arith.constant 0 : index
    %23 = vector.load %arg2[%c2, %c0_13, %c0_14] : memref<3x128x128xbf16, #tpu.memory_space<vmem>>, vector<1x128x128xbf16>
    %24 = vector.shape_cast %23 : vector<1x128x128xbf16> to vector<128x128xbf16>
    %cst_15 = arith.constant dense<0.000000e+00> : vector<512x128xf32>
    %25 = tpu.matmul %22, %24, %cst_15 {dimension_numbers = #tpu.dot_dimension_numbers<[1], [0], [0], [1], [0, 0, 1, 1], [], []>} : vector<512x128xbf16>, vector<128x128xbf16>, vector<512x128xf32> -> vector<512x128xf32>
    %c2_16 = arith.constant 2 : index
    %c0_17 = arith.constant 0 : index
    %26 = vector.load %arg3[%c2_16, %c0_17] : memref<3x128xf32, #tpu.memory_space<vmem>>, vector<1x128xf32>
    %27 = vector.shape_cast %26 : vector<1x128xf32> to vector<128xf32>
    %28 = vector.shape_cast %27 : vector<128xf32> to vector<1x128xf32>
    %29 = vector.broadcast %28 : vector<1x128xf32> to vector<512x128xf32>
    %30 = arith.addf %25, %29 : vector<512x128xf32>
    %c0_18 = arith.constant 0 : index
    %c0_19 = arith.constant 0 : index
    %31 = vector.load %arg4[%c0_18, %c0_19] : memref<512x128xf32, #tpu.memory_space<vmem>>, vector<512x128xf32>
    tpu.vector_store %arg4[%c0_18, %c0_19], %30 {strides = array<i32>} : memref<512x128xf32, #tpu.memory_space<vmem>>, vector<512x128xf32>,
    return
  }
  func.func @transform_0(%arg0: i32) -> (i32, i32) {
    %c0_i32 = arith.constant 0 : i32
    %c0_i32_0 = arith.constant 0 : i32
    return %arg0, %c0_i32 : i32, i32
  }
  func.func @transform_1(%arg0: i32) -> (i32, i32, i32) {
    %c0_i32 = arith.constant 0 : i32
    %c0_i32_0 = arith.constant 0 : i32
    %c0_i32_1 = arith.constant 0 : i32
    %c0_i32_2 = arith.constant 0 : i32
    return %c0_i32, %c0_i32_0, %c0_i32_1 : i32, i32, i32
  }
  func.func @transform_2(%arg0: i32) -> (i32, i32) {
    %c0_i32 = arith.constant 0 : i32
    %c0_i32_0 = arith.constant 0 : i32
    %c0_i32_1 = arith.constant 0 : i32
    return %c0_i32, %c0_i32_0 : i32, i32
  }
  func.func @transform_3(%arg0: i32) -> (i32, i32) {
    %c0_i32 = arith.constant 0 : i32
    %c0_i32_0 = arith.constant 0 : i32
    return %arg0, %c0_i32 : i32, i32
  }
}

</mosaic_0001>

<bundles_post_ra>
// kernel: tpu_custom_call.1
= control target key start
LH: loop header
LB: loop body
LE: loop exit
PB: predicated region body
PF: predicated region fallthrough
CT: control target
= control target key end

     0   :  { %8 = vsyncpa [#allocation3], 0  ;;  %s3227_s0 = inlined_call_operand.hbm [shape: bf16[1024,128], index: 0, kind: input, shape index: {}]   ;;  %s3228_s1 = inlined_call_operand.hbm [shape: bf16[3,128,128], index: 1, kind: input, shape index: {}]   ;;  %s3229_s2 = inlined_call_operand.hbm [shape: f32[3,128], index: 2, kind: input, shape index: {}]   ;;  %s3230_s3 = inlined_call_operand.hbm [shape: f32[1024,128], index: 3, kind: output, shape index: {}]  }
   0x1   :  { %10 = vsyncpa [#allocation3 + $0x1], 0 }
   0x2   :  { %11 = vsyncpa [#allocation6], 0 }
   0x3   :  { %12 = vsyncpa [#allocation4], 0 }
   0x4   :  { %14 = vsyncpa [#allocation4 + $0x1], 0  ;;  %s2673_s12 = smov 0   ;;  %s2675_s13 = smov 0  }
   0x5   :  { %s2677_s14 = smov 0   ;;  %s2679_s15 = smov 0  }
   0x6 LB: > { %s2694_s16 = sadd.s32 4294967295, %s2643_s15   ;;  %s1913_s17 = sadd.s32 4294967294, %s2643_s15   ;;  %s2643_s15 = sphi %s2679_s15, %s3251_s15   ;;  %s2639_s14 = sphi %s2677_s14, %s3250_s14   ;;  %s2635_s13 = sphi %s2675_s13, %s3249_s13   ;;  %s2631_s12 = sphi %s2673_s12, %s3248_s12  }
   0x7   : > { %p40_p0 = scmp.ne.s32.totalorder %s2635_s13, %s2631_s12  ;;  %p3231_p1 = scmp.eq.s32.totalorder %s2694_s16, 0 }
   0x8   : > { %p106_p2 = scmp.eq.s32.totalorder %s2694_s16, 1  ;;  %p112_p3 = scmp.eq.s32.totalorder %s1913_s17, 1 }
   0x9   : > { %p2703_p4 = por %p3231_p1, %p40_p0  ;;  %p1914_p5 = scmp.ge.s32.totalorder %s2643_s15, 1 }
   0xa   : > { %p2708_p6 = por %p112_p3, %p40_p0  ;;  %p119_p7 = scmp.lt.s32.totalorder %s2643_s15, 3 }
   0xb   : > { %s3235_s18 = scalar_select %p2703_p4, 1, 0 }
   0xc   : > { %s3236_s19 = scalar_select %p2708_p6, 1, 0 }
   0xd   : > { %p2713_p8 = pnand %p1914_p5, %p119_p7  ;;  %s2645_s21 = smov [#allocation5]  }
   0xe   : > { %s131_s22 = sshll.u32 %s2645_s21, 4  ;;  %s2646_s24 = smov [#allocation7]   ;;  %s132_s22 = int_to_ptr.vmem [resolvable:$true] %s131_s22 }
   0xf   : > { %s3237_s20 = scalar_select %p2713_p8, 1, 0 }
  0x10   : > { %p2380_p9 = pneg %p2713_p8  ;;  %s145_s25 = sshll.u32 %s2646_s24, 4  ;;  %s146_s25 = int_to_ptr.vmem [resolvable:$true] %s145_s25 }
  0x11   : > { %s2506_s26 = scalar_lea.vmem %s132_s22, 3072  ;;  %p2514_p5 = scmp.lt.s32.totalorder %s132_s22, %s132_s22 }
  0x12   : > { %p2722_p11 = pnand %p2380_p9, %p3231_p1  ;;  %p2507_p13 = scmp.ne.s32.totalorder %s132_s22, %s2506_s26 }
  0x13   : > { %p2515_p7 = scmp.lt.s32.totalorder %s2506_s26, %s2506_s26 }
  0x14   : > { %p2497_p12 = pneg %p2722_p11 }
  0x15   : > { %p2516_p10 = por %p2515_p7, %p2514_p5 }
  0x16   : > { %p2509_p0 = pnand %p2507_p13, %p2497_p12 }
  0x18   : > { %p2510_p3 = pneg %p2509_p0 }
  0x1a   : > { %p2517_p9 = pnand %p2516_p10, %p2510_p3 }
  0x1c   : > { %2520 = shalt.err (!%p2517_p9)
}
  0x1d   : > { %s2647_s27 = smov 64   ;;  %s2648_s28 = smov 4  }
  0x1e   : > { %2383 = dma.hbm_to_vmem [thread:$0]  (!%p2722_p11), %s3228_s1, 3072, %s132_s22, [#allocation6], %s2647_s27, %s2647_s27, %s2648_s28  }
  0x1f   : > { %s2532_s4 = scalar_lea.vmem %s146_s25, 64  ;;  %p2540_p10 = scmp.lt.s32.totalorder %s146_s25, %s146_s25 }
  0x20   : > { %p2533_p13 = scmp.ne.s32.totalorder %s146_s25, %s2532_s4  ;;  %p2541_p3 = scmp.lt.s32.totalorder %s2532_s4, %s2532_s4 }
  0x22   : > { %p2535_p0 = pnand %p2533_p13, %p2497_p12  ;;  %p2542_p7 = por %p2541_p3, %p2540_p10 }
  0x24   : > { %p2536_p5 = pneg %p2535_p0 }
  0x26   : > { %p2543_p9 = pnand %p2542_p7, %p2536_p5 }
  0x28   : > { %2546 = shalt.err (!%p2543_p9)
}
  0x29   : > { %2386 = dma.hbm_to_vmem [thread:$0]  (!%p2722_p11), %s3229_s2, 64, %s146_s25, [#allocation6]  }
  0x2a   : > { %s2748_s7 = sadd.s32 1, %s2643_s15   ;;  %s27_s8 = sadd.s32 1, %s2639_s14 }
  0x2b   : > { %s24_s9 = ssub.s32 %s2643_s15, %s2748_s7  ;;  %p34_p12 = scmp.ne.s32.totalorder %s2639_s14, %s2635_s13 }
  0x2c   : > { %p25_p13 = scmp.eq.s32.totalorder %s24_s9, 0  ;;  %p35_p0 = scmp.eq.s32.totalorder %s2643_s15, 0 }
  0x2d   : > { %p2758_p5 = por %p106_p2, %p34_p12  ;;  %p2397_p10 = scmp.lt.s32.totalorder %s2643_s15, 2 }
  0x2e   : > { %s2764_s11 = scalar_select %p25_p13, %s2639_s14, %s27_s8  }
  0x2f   : > { %s3239_s10 = scalar_select %p2758_p5, 1, 0 }
  0x30   : > { %p36_p3 = por %p35_p0, %p34_p12  ;;  %s156_s17 = sand.u32 1, %s2639_s14  }
  0x31   : > { %s1918_s21 = sshll.u32 %s156_s17, 8  ;;  %s1990_s22 = sshll.u32 %s2643_s15, 12 }
  0x32   : > { %s2771_s25 = scalar_lea.hbm %s3227_s0, %s1990_s22  ;;  %s160_s26 = scalar_lea.vmem [#allocation2], %s1918_s21 }
  0x33   : > { %s167_s29 = sshll.u32 %s160_s26, 4  ;;  %p2775_p2 = pnand %p2397_p10, %p36_p3  ;;  %s2773_s29 = int_to_ptr.vmem [resolvable:$true] %s167_s29 }
  0x34   : > { %s2779_s4 = scalar_lea.sflag [#allocation3], %s156_s17  ;;  %s2547_s5 = scalar_lea.hbm %s2771_s25, 4096 }
  0x35   : > { %p2548_p11 = scmp.ne.s32.totalorder %s2771_s25, %s2547_s5  ;;  %p2549_p7 = pneg %p2775_p2 }
  0x36   : > { %s2552_s9 = scalar_lea.hbm %s3227_s0, 8192  ;;  %p2553_p13 = scmp.lt.s32.totalorder %s2771_s25, %s3227_s0 }
  0x37   : > { %p2550_p9 = pnand %p2549_p7, %p2548_p11  ;;  %p2554_p0 = scmp.lt.s32.totalorder %s2552_s9, %s2547_s5 }
  0x39   : > { %p2551_p12 = pneg %p2550_p9  ;;  %p2555_p10 = por %p2554_p0, %p2553_p13 }
  0x3b   : > { %p2556_p3 = pnand %p2555_p10, %p2551_p12 }
  0x3d   : > { %2559 = shalt.err (!%p2556_p3)
}
  0x3e   : > { %s2560_s17 = scalar_lea.vmem %s2773_s29, 4096  ;;  %s2649_s23 = smov [#allocation2]  }
  0x3f   : > { %p2561_p1 = scmp.ne.s32.totalorder %s2773_s29, %s2560_s17  ;;  %s2565_s24 = sshll.u32 %s2649_s23, 4  ;;  %s2566_s24 = int_to_ptr.vmem [resolvable:$false] %s2565_s24 }
  0x40   : > { %s2567_s26 = scalar_lea.vmem %s2566_s24, 8192  ;;  %p2568_p9 = scmp.lt.s32.totalorder %s2773_s29, %s2566_s24 }
  0x41   : > { %p2563_p6 = pnand %p2561_p1, %p2549_p7  ;;  %p2569_p5 = scmp.lt.s32.totalorder %s2567_s26, %s2560_s17 }
  0x43   : > { %p2564_p11 = pneg %p2563_p6  ;;  %p2570_p4 = por %p2569_p5, %p2568_p9 }
  0x45   : > { %p2571_p8 = pnand %p2570_p4, %p2564_p11 }
  0x47   : > { %2574 = shalt.err (!%p2571_p8)
}
  0x48   : > { %2390 = dma.hbm_to_vmem [thread:$0]  (!%p2775_p2), %s2771_s25, 4096, %s2773_s29, %s2779_s4, %s2647_s27, %s2647_s27, %s2648_s28  }
  0x49   : > { %p3241_p1 = scmp.ne.s32.totalorder %s3237_s20, 0 }
  0x4a   : > { %s2806_s5 = sand.u32 (!%p3241_p1), 1, %s2635_s13   ;;  %p3242_p4 = scmp.ne.s32.totalorder (!%p3241_p1), %s3235_s18, 0 }
  0x4b   : > { %179 = sbr.rel (%p3241_p1) target bundleno = 864 (0x360), region = 32  ;;  %s1922_s6 = sshll.u32 (!%p3241_p1), %s2806_s5, 8 }
  0x4c   : > { %s182_s8 = scalar_lea.sflag (!%p3241_p1), [#allocation3], %s2806_s5  ;;  %s2810_s9 = scalar_lea.vmem (!%p3241_p1), [#allocation2], %s1922_s6 }
  0x50   : > { %2618 = dma.done.wait (%p3242_p4), %s182_s8, 4096  }
  0x51   : > { %2620 = vsyncadd (%p3242_p4), %s182_s8, 4294963200  ;;  %p3243_p6 = scmp.eq.s32.totalorder %s2694_s16, 0 }
  0x53   : > { %2622 = dma.done.wait (%p3243_p6), [#allocation6], 3136   ;;  %p3244_p8 = pmov %p3243_p6 }
  0x54   : > { %v2439_v0 = vld [vmem:[#allocation5 + $0x38] sm:$0xff]   ;;  %v2440_v1 = vld [vmem:[#allocation5 + $0x30] sm:$0xff]   ;;  %v2441_v2 = vld [vmem:[#allocation5 + $0x28] sm:$0xff]   ;;  %s1925_s18 = sshll.u32 %s2806_s5, 9  ;;  %s1991_s27 = sshll.u32 %s2694_s16, 13 }
  0x55   : > { %2624 = vsyncadd (%p3244_p8), [#allocation6], 4294964160  ;;  %2112 = vmatprep.subr.bf16.mxu0 %v2439_v0  ;;  %2352 = vmatprep.subr.bf16.mxu1 %v2439_v0  ;;  %v2442_v3 = vld [vmem:[#allocation5 + $0x20] sm:$0xff]   ;;  %v2443_v5 = vld [vmem:[#allocation5 + $0x18] sm:$0xff]   ;;  %s3048_s20 = scalar_lea.vmem [#allocation8], %s1925_s18  ;;  %s3179_s30 = scalar_lea.hbm %s3230_s3, %s1991_s27 }
  0x56   : > { %2113 = vmatpush3.bf16.msra.mxu0 %v2439_v0  ;;  %2360 = vmatpush3.bf16.msra.mxu1 %v2439_v0  ;;  %v2447_v4 = vld [vmem:[%s2810_s9] sm:$0xff]   ;;  %v2444_v6 = vld [vmem:[#allocation5 + $0x10] sm:$0xff]   ;;  %v2445_v7 = vld [vmem:[#allocation5 + $0x8] sm:$0xff]   ;;  %s1821_s28 = sshll.u32 %s3048_s20, 4  ;;  %s1808_s16 = scalar_lea.sflag [#allocation4], %s2806_s5  ;;  %s3181_s28 = int_to_ptr.vmem [resolvable:$true] %s1821_s28 }
  0x57   : > { %2114 = vmatprep.subr.bf16.mxu0 %v2440_v1  ;;  %2353 = vmatprep.subr.bf16.mxu1 %v2440_v1  ;;  %v2446_v8 = vld [vmem:[#allocation5] sm:$0xff]   ;;  %v2448_v10 = vld [vmem:[%s2810_s9 + $0x8] sm:$0xff]   ;;  %v2449_v11 = vld [vmem:[%s2810_s9 + $0x10] sm:$0xff]   ;;  %s2575_s4 = scalar_lea.vmem %s3181_s28, 8192  ;;  %p3245_p2 = scmp.ne.s32.totalorder %s3239_s10, 0 }
  0x58   : > { %2128 = vmatprep.mubr.bf16.mxu0 %v2447_v4  ;;  %v2463_v9 = vld [vmem:[%s2810_s9 + $0x80] sm:$0xff]   ;;  %v2464_v12 = vld [vmem:[%s2810_s9 + $0x88] sm:$0xff]   ;;  %v2465_v13 = vld [vmem:[%s2810_s9 + $0x90] sm:$0xff]   ;;  %p2576_p5 = scmp.ne.s32.totalorder %s3181_s28, %s2575_s4  ;;  %s2650_s21 = smov [#allocation8]  }
  0x59   : > { %2160 = vmatprep.mubr.bf16.mxu1 %v2463_v9  ;;  %v2450_v14 = vld [vmem:[%s2810_s9 + $0x18] sm:$0xff]   ;;  %v2451_v15 = vld [vmem:[%s2810_s9 + $0x20] sm:$0xff]   ;;  %v2480_v19 = vld [vmem:[#allocation5 + $0x70] sm:$0xff]   ;;  %s2579_s22 = sshll.u32 %s2650_s21, 4  ;;  %s2580_s22 = int_to_ptr.vmem [resolvable:$false] %s2579_s22 }
  0x5a   : > { %2115 = vmatpush3.bf16.msra.mxu0 %v2440_v1  ;;  %2361 = vmatpush3.bf16.msra.mxu1 %v2440_v1  ;;  %v2466_v16 = vld [vmem:[%s2810_s9 + $0x98] sm:$0xff]   ;;  %v2467_v17 = vld [vmem:[%s2810_s9 + $0xa0] sm:$0xff]   ;;  %v2452_v20 = vld [vmem:[%s2810_s9 + $0x28] sm:$0xff]   ;;  %p2577_p7 = pnand %p2576_p5, %p3245_p2  ;;  %s2581_s17 = scalar_lea.vmem %s2580_s22, 16384 }
  0x5b   : > { %2116 = vmatprep.subr.bf16.mxu0 %v2441_v2  ;;  %2354 = vmatprep.subr.bf16.mxu1 %v2441_v2  ;;  %v2479_v18 = vld [vmem:[#allocation5 + $0x78] sm:$0xff]   ;;  %v2468_v21 = vld [vmem:[%s2810_s9 + $0xa8] sm:$0xff]   ;;  %v2453_v22 = vld [vmem:[%s2810_s9 + $0x30] sm:$0xff]   ;;  %p2582_p13 = scmp.lt.s32.totalorder %s3181_s28, %s2580_s22  ;;  %p2583_p0 = scmp.lt.s32.totalorder %s2581_s17, %s2575_s4 }
  0x5c   : > { %v2469_v23 = vld [vmem:[%s2810_s9 + $0xb0] sm:$0xff]   ;;  %v2481_v24 = vld [vmem:[#allocation5 + $0x68] sm:$0xff]   ;;  %v2482_v25 = vld [vmem:[#allocation5 + $0x60] sm:$0xff]   ;;  %p2578_p12 = pneg %p2577_p7 }
  0x5d   : > { %v2454_v26 = vld [vmem:[%s2810_s9 + $0x38] sm:$0xff]   ;;  %v2455_v28 = vld [vmem:[%s2810_s9 + $0x40] sm:$0xff]   ;;  %v2484_v31 = vld [vmem:[#allocation5 + $0x50] sm:$0xff]   ;;  %p2584_p10 = por %p2583_p0, %p2582_p13 }
  0x5e   : > { %2117 = vmatpush3.bf16.msra.mxu0 %v2441_v2  ;;  %2362 = vmatpush3.bf16.msra.mxu1 %v2441_v2  ;;  %v2470_v27 = vld [vmem:[%s2810_s9 + $0xb8] sm:$0xff]   ;;  %v2471_v29 = vld [vmem:[%s2810_s9 + $0xc0] sm:$0xff]   ;;  %v2456_v32 = vld [vmem:[%s2810_s9 + $0x48] sm:$0xff]  }
  0x5f   : > { %2118 = vmatprep.subr.bf16.mxu0 %v2442_v3  ;;  %2355 = vmatprep.subr.bf16.mxu1 %v2442_v3  ;;  %v2483_v30 = vld [vmem:[#allocation5 + $0x58] sm:$0xff]   ;;  %v2472_v33 = vld [vmem:[%s2810_s9 + $0xc8] sm:$0xff]   ;;  %v2457_v34 = vld [vmem:[%s2810_s9 + $0x50] sm:$0xff]   ;;  %p2585_p3 = pnand %p2584_p10, %p2578_p12 }
  0x60   : > { %v2473_v35 = vld [vmem:[%s2810_s9 + $0xd0] sm:$0xff]   ;;  %v2485_v36 = vld [vmem:[#allocation5 + $0x48] sm:$0xff]   ;;  %v2458_v37 = vld [vmem:[%s2810_s9 + $0x58] sm:$0xff]  }
  0x61   : > { %v2474_v38 = vld [vmem:[%s2810_s9 + $0xd8] sm:$0xff]   ;;  %v2459_v39 = vld [vmem:[%s2810_s9 + $0x60] sm:$0xff]   ;;  %v2460_v41 = vld [vmem:[%s2810_s9 + $0x68] sm:$0xff]  }
  0x62   : > { %2119 = vmatpush3.bf16.msra.mxu0 %v2442_v3  ;;  %2363 = vmatpush3.bf16.msra.mxu1 %v2442_v3  ;;  %v2475_v40 = vld [vmem:[%s2810_s9 + $0xe0] sm:$0xff]   ;;  %v2476_v42 = vld [vmem:[%s2810_s9 + $0xe8] sm:$0xff]   ;;  %v2461_v43 = vld [vmem:[%s2810_s9 + $0x70] sm:$0xff]  }
  0x63   : > { %2120 = vmatprep.subr.bf16.mxu0 %v2443_v5  ;;  %2356 = vmatprep.subr.bf16.mxu1 %v2443_v5  ;;  %v2477_v44 = vld [vmem:[%s2810_s9 + $0xf0] sm:$0xff]   ;;  %v2462_v45 = vld [vmem:[%s2810_s9 + $0x78] sm:$0xff]   ;;  %v2486_v47 = vld [vmem:[#allocation5 + $0x40] sm:$0xff]  }
  0x64   : > { %v2478_v46 = vld [vmem:[%s2810_s9 + $0xf8] sm:$0xff]   ;;  %v2856_v52 = vld [vmem:[#allocation7] ss:$0 sm:$0xff]  ;;  %v2488_v61 = vld [vmem:[#allocation5 + $0xb0] sm:$0xff]  }
  0x65   : > { %v2487_v60 = vld [vmem:[#allocation5 + $0xb8] sm:$0xff]  }
  0x66   : > { %2121 = vmatpush3.bf16.msra.mxu0 %v2443_v5  ;;  %2364 = vmatpush3.bf16.msra.mxu1 %v2443_v5 }
  0x67   : > { %2122 = vmatprep.subr.bf16.mxu0 %v2444_v6  ;;  %2357 = vmatprep.subr.bf16.mxu1 %v2444_v6 }
  0x6a   : > { %2123 = vmatpush3.bf16.msra.mxu0 %v2444_v6  ;;  %2365 = vmatpush3.bf16.msra.mxu1 %v2444_v6 }
  0x6b   : > { %2124 = vmatprep.subr.bf16.mxu0 %v2445_v7  ;;  %2358 = vmatprep.subr.bf16.mxu1 %v2445_v7 }
  0x6e   : > { %2125 = vmatpush3.bf16.msra.mxu0 %v2445_v7  ;;  %2366 = vmatpush3.bf16.msra.mxu1 %v2445_v7  ;;  %v2489_v7 = vld [vmem:[#allocation5 + $0xa8] sm:$0xff]  }
  0x6f   : > { %2126 = vmatprep.subr.bf16.mxu0 %v2446_v8  ;;  %2359 = vmatprep.subr.bf16.mxu1 %v2446_v8 }
  0x72   : > { %2127 = vmatpush3.bf16.msra.mxu0 %v2446_v8  ;;  %2367 = vmatpush3.bf16.msra.mxu1 %v2446_v8 }
  0x73   : > { %2192 = vmatprep.subr.bf16.mxu1 %v2479_v18  ;;  %2272 = vmatprep.subr.bf16.mxu0 %v2487_v60 }
  0x75   : > { %2129 = vmatmul.mubr.bf16.vlgmr.msra.gmra.mxu0 %v2448_v10  ;;  %2161 = vmatmul.mubr.bf16.vlgmr.msra.gmra.mxu1 %v2464_v12 }
  0x76   : > { %2132 = vmatprep.mubr.bf16.mxu0 %v2449_v11  ;;  %2164 = vmatprep.mubr.bf16.mxu1 %v2465_v13 }
  0x77   : > { %2193 = vmatpush3.bf16.msra.mxu1 %v2479_v18  ;;  %2273 = vmatpush3.bf16.msra.mxu0 %v2487_v60 }
  0x78   : > { %2194 = vmatprep.subr.bf16.mxu1 %v2480_v19  ;;  %2274 = vmatprep.subr.bf16.mxu0 %v2488_v61 }
  0x7b   : > { %2195 = vmatpush3.bf16.msra.mxu1 %v2480_v19  ;;  %2275 = vmatpush3.bf16.msra.mxu0 %v2488_v61 }
  0x7c   : > { %2196 = vmatprep.subr.bf16.mxu1 %v2481_v24  ;;  %2276 = vmatprep.subr.bf16.mxu0 %v2489_v7 }
  0x7d   : > { %2133 = vmatmul.mubr.bf16.gmra.mxu0 %v2450_v14  ;;  %2165 = vmatmul.mubr.bf16.gmra.mxu1 %v2466_v16  ;;  %v2490_v16 = vld [vmem:[#allocation5 + $0xa0] sm:$0xff]  }
  0x7e   : > { %2136 = vmatprep.mubr.bf16.mxu0 %v2451_v15  ;;  %2168 = vmatprep.mubr.bf16.mxu1 %v2467_v17 }
  0x7f   : > { %2197 = vmatpush3.bf16.msra.mxu1 %v2481_v24  ;;  %2277 = vmatpush3.bf16.msra.mxu0 %v2489_v7 }
  0x80   : > { %2198 = vmatprep.subr.bf16.mxu1 %v2482_v25  ;;  %2278 = vmatprep.subr.bf16.mxu0 %v2490_v16 }
  0x83   : > { %2199 = vmatpush3.bf16.msra.mxu1 %v2482_v25  ;;  %v2491_v25 = vld [vmem:[#allocation5 + $0x98] sm:$0xff]   ;;  %2279 = vmatpush3.bf16.msra.mxu0 %v2490_v16 }
  0x84   : > { %2200 = vmatprep.subr.bf16.mxu1 %v2483_v30  ;;  %2280 = vmatprep.subr.bf16.mxu0 %v2491_v25 }
  0x85   : > { %2137 = vmatmul.mubr.bf16.gmra.mxu0 %v2452_v20  ;;  %2169 = vmatmul.mubr.bf16.gmra.mxu1 %v2468_v21 }
  0x86   : > { %2140 = vmatprep.mubr.bf16.mxu0 %v2453_v22  ;;  %2172 = vmatprep.mubr.bf16.mxu1 %v2469_v23 }
  0x87   : > { %2201 = vmatpush3.bf16.msra.mxu1 %v2483_v30  ;;  %2281 = vmatpush3.bf16.msra.mxu0 %v2491_v25 }
  0x88   : > { %2202 = vmatprep.subr.bf16.mxu1 %v2484_v31 }
  0x8b   : > { %2203 = vmatpush3.bf16.msra.mxu1 %v2484_v31 }
  0x8c   : > { %2204 = vmatprep.subr.bf16.mxu1 %v2485_v36 }
  0x8d   : > { %2141 = vmatmul.mubr.bf16.gmra.mxu0 %v2454_v26  ;;  %2173 = vmatmul.mubr.bf16.gmra.mxu1 %v2470_v27 }
  0x8e   : > { %2144 = vmatprep.mubr.bf16.mxu0 %v2455_v28  ;;  %2176 = vmatprep.mubr.bf16.mxu1 %v2471_v29 }
  0x8f   : > { %2205 = vmatpush3.bf16.msra.mxu1 %v2485_v36 }
  0x90   : > { %2206 = vmatprep.subr.bf16.mxu1 %v2486_v47 }
  0x93   : > { %2207 = vmatpush3.bf16.msra.mxu1 %v2486_v47 }
  0x95   : > { %2145 = vmatmul.mubr.bf16.gmra.mxu0 %v2456_v32  ;;  %2177 = vmatmul.mubr.bf16.gmra.mxu1 %v2472_v33 }
  0x96   : > { %2148 = vmatprep.mubr.bf16.mxu0 %v2457_v34  ;;  %2180 = vmatprep.mubr.bf16.mxu1 %v2473_v35  ;;  %v2492_v34 = vld [vmem:[#allocation5 + $0x90] sm:$0xff]  }
  0x97   : > { %2282 = vmatprep.subr.bf16.mxu0 %v2492_v34 }
  0x98   : > { %2283 = vmatpush3.bf16.msra.mxu0 %v2492_v34 }
  0x9d   : > { %2149 = vmatmul.mubr.bf16.gmra.mxu0 %v2458_v37  ;;  %2181 = vmatmul.mubr.bf16.gmra.mxu1 %v2474_v38 }
  0x9e   : > { %2152 = vmatprep.mubr.bf16.mxu0 %v2459_v39  ;;  %2184 = vmatprep.mubr.bf16.mxu1 %v2475_v40 }
  0xa5   : > { %2153 = vmatmul.mubr.bf16.gmra.mxu0 %v2460_v41  ;;  %2185 = vmatmul.mubr.bf16.gmra.mxu1 %v2476_v42 }
  0xa6   : > { %2156 = vmatprep.mubr.bf16.mxu0 %v2461_v43  ;;  %2188 = vmatprep.mubr.bf16.mxu1 %v2477_v44  ;;  %v2493_v43 = vld [vmem:[#allocation5 + $0x88] sm:$0xff]  }
  0xa7   : > { %2284 = vmatprep.subr.bf16.mxu0 %v2493_v43 }
  0xa8   : > { %2285 = vmatpush3.bf16.msra.mxu0 %v2493_v43 }
  0xad   : > { %2157 = vmatmul.mubr.bf16.gmra.mxu0 %v2462_v45  ;;  %2189 = vmatmul.mubr.bf16.gmra.mxu1 %v2478_v46 }
 0x135   : > { %v2130_v48 = vpop.f32.mrf.mxu0  ;;  %v2852_v49 = vpop.f32.mrf.mxu1 }
 0x136   : > { %v587_v57 = vadd.f32 %v2130_v48, %v2856_v52 }
 0x137   : > { %v578_v50 = vpop.f32.mrf.mxu0  ;;  %v2854_v51 = vpop.f32.mrf.mxu1 }
 0x138   : > { %v579_v55 = vadd.f32 %v2856_v52, %v578_v50  ;;  %v835_v4 = vmax.f32 %v587_v57, 0.0 }
 0x139   : > { %v2131_v53 = vpop.f32.mrf.mxu0  ;;  %v2858_v54 = vpop.f32.mrf.mxu1 }
 0x13a   : > { %v590_v56 = vadd.f32 %v2131_v53, %v2856_v52  ;;  %v833_v2 = vmax.f32 %v579_v55, 0.0 }
 0x13b   : > { %v581_v58 = vpop.f32.mrf.mxu0  ;;  %v2863_v59 = vpop.f32.mrf.mxu1 }
 0x13c   : > { %v582_v62 = vadd.f32 %v2856_v52, %v581_v58  ;;  %v836_v63 = vmax.f32 %v590_v56, 0.0 }
 0x13d   : > { %v2134_v0 = vpop.f32.mrf.mxu0  ;;  %v2866_v1 = vpop.f32.mrf.mxu1 }
 0x13e   : > { %v834_v3 = vmax.f32 %v582_v62, 0.0  ;;  %v898_v9 = vpack.c.bf16 %v836_v63, %v835_v4  ;;  %v603_v14 = vadd.f32 %v2134_v0, %v2856_v52 }
 0x13f   : > { %v594_v5 = vpop.f32.mrf.mxu0  ;;  %v2868_v6 = vpop.f32.mrf.mxu1 }
 0x140   : > { %v897_v8 = vpack.c.bf16 %v834_v3, %v833_v2  ;;  %v595_v12 = vadd.f32 %v2856_v52, %v594_v5  ;;  %v839_v23 = vmax.f32 %v603_v14, 0.0 }
 0x141   : > { %v2135_v10 = vpop.f32.mrf.mxu0  ;;  %v2870_v11 = vpop.f32.mrf.mxu1 }
 0x142   : > { %v606_v13 = vadd.f32 %v2135_v10, %v2856_v52  ;;  %2208 = vmatprep.mubr.bf16.mxu1 %v897_v8  ;;  %v837_v21 = vmax.f32 %v595_v12, 0.0 }
 0x143   : > { %v597_v15 = vpop.f32.mrf.mxu0  ;;  %2209 = vmatmul.mubr.bf16.vlgmr.msra.gmra.mxu1 %v898_v9  ;;  %v2876_v20 = vpop.f32.mrf.mxu1 }
 0x144   : > { %v598_v17 = vadd.f32 %v2856_v52, %v597_v15  ;;  %v840_v18 = vmax.f32 %v606_v13, 0.0 }
 0x145   : > { %v2138_v19 = vpop.f32.mrf.mxu0  ;;  %v2878_v29 = vpop.f32.mrf.mxu1 }
 0x146   : > { %v838_v22 = vmax.f32 %v598_v17, 0.0  ;;  %v900_v27 = vpack.c.bf16 %v840_v18, %v839_v23  ;;  %v619_v32 = vadd.f32 %v2138_v19, %v2856_v52 }
 0x147   : > { %v610_v24 = vpop.f32.mrf.mxu0  ;;  %v2884_v38 = vpop.f32.mrf.mxu1 }
 0x148   : > { %v899_v26 = vpack.c.bf16 %v838_v22, %v837_v21  ;;  %v611_v30 = vadd.f32 %v2856_v52, %v610_v24  ;;  %v843_v41 = vmax.f32 %v619_v32, 0.0 }
 0x149   : > { %v2139_v28 = vpop.f32.mrf.mxu0  ;;  %v2886_v47 = vpop.f32.mrf.mxu1 }
 0x14a   : > { %v622_v31 = vadd.f32 %v2139_v28, %v2856_v52  ;;  %2212 = vmatprep.mubr.bf16.mxu1 %v899_v26  ;;  %v841_v39 = vmax.f32 %v611_v30, 0.0 }
 0x14b   : > { %v613_v33 = vpop.f32.mrf.mxu0  ;;  %2213 = vmatmul.mubr.bf16.gmra.mxu1 %v900_v27  ;;  %v2892_v60 = vpop.f32.mrf.mxu1 }
 0x14c   : > { %v614_v35 = vadd.f32 %v2856_v52, %v613_v33  ;;  %v844_v36 = vmax.f32 %v622_v31, 0.0 }
 0x14d   : > { %v2142_v37 = vpop.f32.mrf.mxu0  ;;  %v2894_v5 = vpop.f32.mrf.mxu1 }
 0x14e   : > { %v842_v40 = vmax.f32 %v614_v35, 0.0  ;;  %v902_v45 = vpack.c.bf16 %v844_v36, %v843_v41  ;;  %v635_v53 = vadd.f32 %v2142_v37, %v2856_v52 }
 0x14f   : > { %v626_v42 = vpop.f32.mrf.mxu0  ;;  %v2900_v15 = vpop.f32.mrf.mxu1 }
 0x150   : > { %v901_v44 = vpack.c.bf16 %v842_v40, %v841_v39  ;;  %v627_v48 = vadd.f32 %v2856_v52, %v626_v42  ;;  %v847_v63 = vmax.f32 %v635_v53, 0.0 }
 0x151   : > { %v2143_v46 = vpop.f32.mrf.mxu0  ;;  %v2902_v24 = vpop.f32.mrf.mxu1 }
 0x152   : > { %v638_v50 = vadd.f32 %v2143_v46, %v2856_v52  ;;  %2216 = vmatprep.mubr.bf16.mxu1 %v901_v44  ;;  %v845_v61 = vmax.f32 %v627_v48, 0.0 }
 0x153   : > { %v629_v55 = vpop.f32.mrf.mxu0  ;;  %2217 = vmatmul.mubr.bf16.gmra.mxu1 %v902_v45  ;;  %v2908_v33 = vpop.f32.mrf.mxu1 }
 0x154   : > { %v630_v56 = vadd.f32 %v2856_v52, %v629_v55  ;;  %v848_v57 = vmax.f32 %v638_v50, 0.0 }
 0x155   : > { %v2146_v58 = vpop.f32.mrf.mxu0  ;;  %v2910_v42 = vpop.f32.mrf.mxu1 }
 0x156   : > { %v846_v62 = vmax.f32 %v630_v56, 0.0  ;;  %v904_v3 = vpack.c.bf16 %v848_v57, %v847_v63  ;;  %v651_v9 = vadd.f32 %v2146_v58, %v2856_v52  ;;  %v707_v63 = vadd.f32 %v2856_v52, %v2854_v51 }
 0x157   : > { %v642_v0 = vpop.f32.mrf.mxu0  ;;  %v2916_v55 = vpop.f32.mrf.mxu1 }
 0x158   : > { %v903_v2 = vpack.c.bf16 %v846_v62, %v845_v61  ;;  %v643_v7 = vadd.f32 %v2856_v52, %v642_v0  ;;  %v851_v18 = vmax.f32 %v651_v9, 0.0  ;;  %v710_v0 = vadd.f32 %v2856_v52, %v2863_v59 }
 0x159   : > { %v2147_v4 = vpop.f32.mrf.mxu0 }
 0x15a   : > { %v654_v8 = vadd.f32 %v2147_v4, %v2856_v52  ;;  %2220 = vmatprep.mubr.bf16.mxu1 %v903_v2  ;;  %v849_v16 = vmax.f32 %v643_v7, 0.0  ;;  %v2922_v4 = vpop.f32.mrf.mxu1  ;;  %v866_v51 = vmax.f32 %v710_v0, 0.0  ;;  %v766_v0 = vadd.f32 %v2902_v24, %v2856_v52 }
 0x15b   : > { %v645_v10 = vpop.f32.mrf.mxu0  ;;  %2221 = vmatmul.mubr.bf16.gmra.mxu1 %v904_v3  ;;  %v782_v24 = vadd.f32 %v2922_v4, %v2856_v52 }
 0x15c   : > { %v646_v12 = vadd.f32 %v2856_v52, %v645_v10  ;;  %v852_v13 = vmax.f32 %v654_v8, 0.0 }
 0x15d   : > { %v2150_v14 = vpop.f32.mrf.mxu0 }
 0x15e   : > { %v850_v17 = vmax.f32 %v646_v12, 0.0  ;;  %v906_v22 = vpack.c.bf16 %v852_v13, %v851_v18  ;;  %v667_v27 = vadd.f32 %v2150_v14, %v2856_v52  ;;  %v865_v12 = vmax.f32 %v707_v63, 0.0 }
 0x15f   : > { %v658_v19 = vpop.f32.mrf.mxu0 }
 0x160   : > { %v905_v21 = vpack.c.bf16 %v850_v17, %v849_v16  ;;  %v659_v25 = vadd.f32 %v2856_v52, %v658_v19  ;;  %v855_v36 = vmax.f32 %v667_v27, 0.0  ;;  %v773_v16 = vpop.f32.mrf.mxu1  ;;  %v718_v27 = vadd.f32 %v2858_v54, %v2856_v52 }
 0x161   : > { %v2151_v23 = vpop.f32.mrf.mxu0  ;;  %v731_v54 = vadd.f32 %v2866_v1, %v2856_v52  ;;  %v747_v1 = vadd.f32 %v2878_v29, %v2856_v52  ;;  %v774_v29 = vadd.f32 %v2856_v52, %v773_v16 }
 0x162   : > { %v670_v26 = vadd.f32 %v2151_v23, %v2856_v52  ;;  %2224 = vmatprep.mubr.bf16.mxu1 %v905_v21  ;;  %v853_v34 = vmax.f32 %v659_v25, 0.0  ;;  %v913_v21 = vpack.c.bf16 %v866_v51, %v865_v12  ;;  %v726_v23 = vadd.f32 %v2856_v52, %v2876_v20 }
 0x163   : > { %v661_v28 = vpop.f32.mrf.mxu0  ;;  %2225 = vmatmul.mubr.bf16.gmra.mxu1 %v906_v22  ;;  %v723_v22 = vadd.f32 %v2856_v52, %v2868_v6  ;;  %v715_v25 = vadd.f32 %v2852_v49, %v2856_v52  ;;  %v739_v20 = vadd.f32 %v2856_v52, %v2884_v38  ;;  %v742_v49 = vadd.f32 %v2856_v52, %v2892_v60 }
 0x164   : > { %v662_v30 = vadd.f32 %v2856_v52, %v661_v28  ;;  %v856_v31 = vmax.f32 %v670_v26, 0.0  ;;  %v2936_v28 = vpop.f32.mrf.mxu1  ;;  %v755_v38 = vadd.f32 %v2856_v52, %v2900_v15  ;;  %v758_v60 = vadd.f32 %v2856_v52, %v2908_v33 }
 0x165   : > { %v2154_v32 = vpop.f32.mrf.mxu0  ;;  %v771_v33 = vadd.f32 %v2856_v52, %v2916_v55 }
 0x166   : > { %v854_v35 = vmax.f32 %v662_v30, 0.0  ;;  %v908_v40 = vpack.c.bf16 %v856_v31, %v855_v36  ;;  %v683_v45 = vadd.f32 %v2154_v32, %v2856_v52  ;;  %v869_v30 = vmax.f32 %v723_v22, 0.0  ;;  %v786_v6 = vpop.f32.mrf.mxu1 }
 0x167   : > { %v674_v37 = vpop.f32.mrf.mxu0  ;;  %v870_v31 = vmax.f32 %v726_v23, 0.0  ;;  %v867_v32 = vmax.f32 %v715_v25, 0.0  ;;  %v787_v55 = vadd.f32 %v2856_v52, %v786_v6 }
 0x168   : > { %v907_v39 = vpack.c.bf16 %v854_v35, %v853_v34  ;;  %v675_v43 = vadd.f32 %v2856_v52, %v674_v37  ;;  %v859_v58 = vmax.f32 %v683_v45, 0.0  ;;  %v868_v34 = vmax.f32 %v718_v27, 0.0 }
 0x169   : > { %v2155_v41 = vpop.f32.mrf.mxu0  ;;  %v915_v35 = vpack.c.bf16 %v870_v31, %v869_v30  ;;  %v734_v37 = vadd.f32 %v2870_v11, %v2856_v52  ;;  %v750_v11 = vadd.f32 %v2886_v47, %v2856_v52  ;;  %v763_v47 = vadd.f32 %v2894_v5, %v2856_v52 }
 0x16a   : > { %v686_v44 = vadd.f32 %v2155_v41, %v2856_v52  ;;  %2228 = vmatprep.mubr.bf16.mxu1 %v907_v39  ;;  %v857_v56 = vmax.f32 %v675_v43, 0.0  ;;  %v914_v36 = vpack.c.bf16 %v868_v34, %v867_v32  ;;  %v2183_v39 = vpop.f32.mrf.mxu1  ;;  %v874_v41 = vmax.f32 %v742_v49, 0.0 }
 0x16b   : > { %v677_v46 = vpop.f32.mrf.mxu0  ;;  %2229 = vmatmul.mubr.bf16.gmra.mxu1 %v908_v40  ;;  %v873_v40 = vmax.f32 %v739_v20, 0.0  ;;  %v871_v43 = vmax.f32 %v731_v54, 0.0  ;;  %v779_v5 = vadd.f32 %v2910_v42, %v2856_v52  ;;  %v885_v16 = vmax.f32 %v787_v55, 0.0 }
 0x16c   : > { %v678_v48 = vadd.f32 %v2856_v52, %v677_v46  ;;  %v860_v50 = vmax.f32 %v686_v44, 0.0  ;;  %v872_v44 = vmax.f32 %v734_v37, 0.0  ;;  %v789_v45 = vpop.f32.mrf.mxu1  ;;  %v795_v42 = vadd.f32 %v2936_v28, %v2856_v52 }
 0x16d   : > { %v2158_v53 = vpop.f32.mrf.mxu0  ;;  %v917_v46 = vpack.c.bf16 %v874_v41, %v873_v40 }
 0x16e   : > { %v858_v57 = vmax.f32 %v678_v48, 0.0  ;;  %v910_v2 = vpack.c.bf16 %v860_v50, %v859_v58  ;;  %v699_v9 = vadd.f32 %v2158_v53, %v2856_v52  ;;  %v916_v48 = vpack.c.bf16 %v872_v44, %v871_v43  ;;  %v2186_v50 = vpop.f32.mrf.mxu1  ;;  %v2494_v53 = vld [vmem:[#allocation5 + $0x80] sm:$0xff]  }
 0x16f   : > { %v690_v61 = vpop.f32.mrf.mxu0  ;;  %v875_v58 = vmax.f32 %v747_v1, 0.0  ;;  %2286 = vmatprep.subr.bf16.mxu0 %v2494_v53  ;;  %v887_v31 = vmax.f32 %v795_v42, 0.0 }
 0x170   : > { %v909_v62 = vpack.c.bf16 %v858_v57, %v857_v56  ;;  %v691_v7 = vadd.f32 %v2856_v52, %v690_v61  ;;  %v863_v18 = vmax.f32 %v699_v9, 0.0  ;;  %v877_v56 = vmax.f32 %v755_v38, 0.0  ;;  %2287 = vmatpush3.bf16.msra.mxu0 %v2494_v53 }
 0x171   : > { %v2159_v3 = vpop.f32.mrf.mxu0  ;;  %v878_v57 = vmax.f32 %v758_v60, 0.0  ;;  %v876_v61 = vmax.f32 %v750_v11, 0.0  ;;  %v880_v9 = vmax.f32 %v766_v0, 0.0  ;;  %v2978_v11 = vld [vmem:[#allocation7 + $0x1] ss:$0 sm:$0xff] }
 0x172   : > { %v702_v8 = vadd.f32 %v2159_v3, %v2856_v52  ;;  %2232 = vmatprep.mubr.bf16.mxu1 %v909_v62  ;;  %v861_v59 = vmax.f32 %v691_v7, 0.0  ;;  %v802_v62 = vpop.f32.mrf.mxu1  ;;  %v881_v3 = vmax.f32 %v771_v33, 0.0  ;;  %v882_v7 = vmax.f32 %v774_v29, 0.0 }
 0x173   : > { %v693_v10 = vpop.f32.mrf.mxu0  ;;  %2233 = vmatmul.mubr.bf16.gmra.mxu1 %v910_v2  ;;  %v919_v15 = vpack.c.bf16 %v878_v57, %v877_v56  ;;  %v918_v63 = vpack.c.bf16 %v876_v61, %v875_v58  ;;  %v803_v22 = vadd.f32 %v2856_v52, %v802_v62 }
 0x174   : > { %v694_v13 = vadd.f32 %v2856_v52, %v693_v10  ;;  %v864_v14 = vmax.f32 %v702_v8, 0.0  ;;  %v2187_v2 = vpop.f32.mrf.mxu1  ;;  %v879_v8 = vmax.f32 %v763_v47, 0.0  ;;  %v921_v12 = vpack.c.bf16 %v882_v7, %v881_v3 }
 0x175   : > { %v889_v27 = vmax.f32 %v803_v22, 0.0  ;;  %v814_v28 = vadd.f32 %v2187_v2, %v2856_v52 }
 0x176   : > { %v862_v17 = vmax.f32 %v694_v13, 0.0  ;;  %v912_v26 = vpack.c.bf16 %v864_v14, %v863_v18  ;;  %v805_v10 = vpop.f32.mrf.mxu1  ;;  %v790_v13 = vadd.f32 %v2856_v52, %v789_v45  ;;  %v920_v51 = vpack.c.bf16 %v880_v9, %v879_v8 }
 0x177   : > { %v884_v18 = vmax.f32 %v782_v24, 0.0  ;;  %v806_v23 = vadd.f32 %v2856_v52, %v805_v10  ;;  %v892_v40 = vmax.f32 %v814_v28, 0.0 }
 0x178   : > { %v911_v19 = vpack.c.bf16 %v862_v17, %v861_v59  ;;  %v2190_v14 = vpop.f32.mrf.mxu1  ;;  %v886_v59 = vmax.f32 %v790_v13, 0.0  ;;  %v883_v17 = vmax.f32 %v779_v5, 0.0 }
 0x179   : > { %v890_v30 = vmax.f32 %v806_v23, 0.0  ;;  %v827_v44 = vadd.f32 %v2190_v14, %v2856_v52 }
 0x17a   : > { %2236 = vmatprep.mubr.bf16.mxu1 %v911_v19  ;;  %v818_v19 = vpop.f32.mrf.mxu1  ;;  %v922_v25 = vpack.c.bf16 %v884_v18, %v883_v17 }
 0x17b   : > { %2237 = vmatmul.mubr.bf16.gmra.mxu1 %v912_v26  ;;  %v798_v26 = vadd.f32 %v2183_v39, %v2856_v52  ;;  %v925_v6 = vpack.c.bf16 %v890_v30, %v889_v27 }
 0x17c   : > { %2240 = vmatprep.mubr.bf16.mxu1 %v913_v21  ;;  %v923_v21 = vpack.c.bf16 %v886_v59, %v885_v16  ;;  %v2191_v4 = vpop.f32.mrf.mxu1 }
 0x17d   : > { %v888_v32 = vmax.f32 %v798_v26, 0.0  ;;  %v830_v45 = vadd.f32 %v2191_v4, %v2856_v52 }
 0x17e   : > { %v821_v34 = vpop.f32.mrf.mxu1 }
 0x17f   : > { %v822_v20 = vadd.f32 %v2856_v52, %v821_v34  ;;  %v924_v49 = vpack.c.bf16 %v888_v32, %v887_v31  ;;  %v896_v38 = vmax.f32 %v830_v45, 0.0 }
 0x181   : > { %v894_v37 = vmax.f32 %v822_v20, 0.0 }
 0x183   : > { %2241 = vmatmul.mubr.bf16.gmra.mxu1 %v914_v36  ;;  %v811_v36 = vadd.f32 %v2186_v50, %v2856_v52 }
 0x184   : > { %2244 = vmatprep.mubr.bf16.mxu1 %v915_v35  ;;  %v819_v35 = vadd.f32 %v2856_v52, %v818_v19 }
 0x185   : > { %v891_v39 = vmax.f32 %v811_v36, 0.0 }
 0x186   : > { %v893_v54 = vmax.f32 %v819_v35, 0.0 }
 0x187   : > { %v926_v43 = vpack.c.bf16 %v892_v40, %v891_v39 }
 0x188   : > { %v927_v41 = vpack.c.bf16 %v894_v37, %v893_v54 }
 0x18b   : > { %2245 = vmatmul.mubr.bf16.gmra.mxu1 %v916_v48 }
 0x18c   : > { %2248 = vmatprep.mubr.bf16.mxu1 %v917_v46  ;;  %v895_v46 = vmax.f32 %v827_v44, 0.0 }
 0x18e   : > { %v928_v60 = vpack.c.bf16 %v896_v38, %v895_v46 }
 0x193   : > { %2249 = vmatmul.mubr.bf16.gmra.mxu1 %v918_v63 }
 0x194   : > { %2252 = vmatprep.mubr.bf16.mxu1 %v919_v15 }
 0x19b   : > { %2253 = vmatmul.mubr.bf16.gmra.mxu1 %v920_v51 }
 0x19c   : > { %2256 = vmatprep.mubr.bf16.mxu1 %v921_v12 }
 0x1a3   : > { %2257 = vmatmul.mubr.bf16.gmra.mxu1 %v922_v25 }
 0x1a4   : > { %2260 = vmatprep.mubr.bf16.mxu1 %v923_v21 }
 0x1ab   : > { %2261 = vmatmul.mubr.bf16.gmra.mxu1 %v924_v49 }
 0x1ac   : > { %2264 = vmatprep.mubr.bf16.mxu1 %v925_v6 }
 0x1b3   : > { %2265 = vmatmul.mubr.bf16.gmra.mxu1 %v926_v43 }
 0x1b4   : > { %2268 = vmatprep.mubr.bf16.mxu1 %v927_v41 }
 0x1bb   : > { %2269 = vmatmul.mubr.bf16.gmra.mxu1 %v928_v60 }
 0x203   : > { %v2210_v48 = vpop.f32.mrf.mxu1 }
 0x204   : > { %v1042_v57 = vadd.f32 %v2210_v48, %v2978_v11 }
 0x205   : > { %v1033_v1 = vpop.f32.mrf.mxu1 }
 0x206   : > { %v1034_v53 = vadd.f32 %v2978_v11, %v1033_v1  ;;  %v1290_v29 = vmax.f32 %v1042_v57, 0.0 }
 0x207   : > { %v2211_v50 = vpop.f32.mrf.mxu1 }
 0x208   : > { %v1045_v56 = vadd.f32 %v2211_v50, %v2978_v11  ;;  %v1288_v15 = vmax.f32 %v1034_v53, 0.0 }
 0x209   : > { %v1036_v58 = vpop.f32.mrf.mxu1 }
 0x20a   : > { %v1037_v52 = vadd.f32 %v2978_v11, %v1036_v58  ;;  %v1291_v61 = vmax.f32 %v1045_v56, 0.0 }
 0x20b   : > { %v2214_v62 = vpop.f32.mrf.mxu1 }
 0x20c   : > { %v1289_v33 = vmax.f32 %v1037_v52, 0.0  ;;  %v1353_v0 = vpack.c.bf16 %v1291_v61, %v1290_v29  ;;  %v1058_v8 = vadd.f32 %v2214_v62, %v2978_v11 }
 0x20d   : > { %v1049_v63 = vpop.f32.mrf.mxu1 }
 0x20e   : > { %v1352_v47 = vpack.c.bf16 %v1289_v33, %v1288_v15  ;;  %v1050_v3 = vadd.f32 %v2978_v11, %v1049_v63  ;;  %v1294_v5 = vmax.f32 %v1058_v8, 0.0 }
 0x20f   : > { %v2215_v2 = vpop.f32.mrf.mxu1 }
 0x210   : > { %v1061_v7 = vadd.f32 %v2215_v2, %v2978_v11  ;;  %2288 = vmatprep.mubr.bf16.mxu0 %v1352_v47  ;;  %v1292_v13 = vmax.f32 %v1050_v3, 0.0 }
 0x211   : > { %v1052_v9 = vpop.f32.mrf.mxu1  ;;  %2289 = vmatmul.mubr.bf16.vlgmr.msra.gmra.mxu0 %v1353_v0 }
 0x212   : > { %v1053_v10 = vadd.f32 %v2978_v11, %v1052_v9  ;;  %v1295_v12 = vmax.f32 %v1061_v7, 0.0 }
 0x213   : > { %v2218_v55 = vpop.f32.mrf.mxu1 }
 0x214   : > { %v1293_v51 = vmax.f32 %v1053_v10, 0.0  ;;  %v1355_v16 = vpack.c.bf16 %v1295_v12, %v1294_v5  ;;  %v1074_v19 = vadd.f32 %v2218_v55, %v2978_v11 }
 0x215   : > { %v1065_v24 = vpop.f32.mrf.mxu1 }
 0x216   : > { %v1354_v14 = vpack.c.bf16 %v1293_v51, %v1292_v13  ;;  %v1066_v17 = vadd.f32 %v2978_v11, %v1065_v24  ;;  %v1298_v4 = vmax.f32 %v1074_v19, 0.0 }
 0x217   : > { %v2219_v59 = vpop.f32.mrf.mxu1 }
 0x218   : > { %v1077_v18 = vadd.f32 %v2219_v59, %v2978_v11  ;;  %2292 = vmatprep.mubr.bf16.mxu0 %v1354_v14  ;;  %v1296_v42 = vmax.f32 %v1066_v17, 0.0 }
 0x219   : > { %v1068_v21 = vpop.f32.mrf.mxu1  ;;  %2293 = vmatmul.mubr.bf16.gmra.mxu0 %v1355_v16 }
 0x21a   : > { %v1069_v22 = vadd.f32 %v2978_v11, %v1068_v21  ;;  %v1299_v23 = vmax.f32 %v1077_v18, 0.0 }
 0x21b   : > { %v2222_v25 = vpop.f32.mrf.mxu1 }
 0x21c   : > { %v1297_v26 = vmax.f32 %v1069_v22, 0.0  ;;  %v1357_v31 = vpack.c.bf16 %v1299_v23, %v1298_v4  ;;  %v1090_v35 = vadd.f32 %v2222_v25, %v2978_v11 }
 0x21d   : > { %v1081_v27 = vpop.f32.mrf.mxu1 }
 0x21e   : > { %v1356_v30 = vpack.c.bf16 %v1297_v26, %v1296_v42  ;;  %v1082_v34 = vadd.f32 %v2978_v11, %v1081_v27  ;;  %v1302_v39 = vmax.f32 %v1090_v35, 0.0 }
 0x21f   : > { %v2223_v32 = vpop.f32.mrf.mxu1 }
 0x220   : > { %v1093_v6 = vadd.f32 %v2223_v32, %v2978_v11  ;;  %2296 = vmatprep.mubr.bf16.mxu0 %v1356_v30  ;;  %v1300_v54 = vmax.f32 %v1082_v34, 0.0 }
 0x221   : > { %v1084_v20 = vpop.f32.mrf.mxu1  ;;  %2297 = vmatmul.mubr.bf16.gmra.mxu0 %v1357_v31 }
 0x222   : > { %v1085_v49 = vadd.f32 %v2978_v11, %v1084_v20  ;;  %v1303_v36 = vmax.f32 %v1093_v6, 0.0 }
 0x223   : > { %v2226_v28 = vpop.f32.mrf.mxu1 }
 0x224   : > { %v1301_v37 = vmax.f32 %v1085_v49, 0.0  ;;  %v1359_v43 = vpack.c.bf16 %v1303_v36, %v1302_v39  ;;  %v1106_v38 = vadd.f32 %v2226_v28, %v2978_v11 }
 0x225   : > { %v1097_v40 = vpop.f32.mrf.mxu1 }
 0x226   : > { %v1358_v41 = vpack.c.bf16 %v1301_v37, %v1300_v54  ;;  %v1098_v45 = vadd.f32 %v2978_v11, %v1097_v40  ;;  %v1306_v57 = vmax.f32 %v1106_v38, 0.0 }
 0x227   : > { %v2227_v44 = vpop.f32.mrf.mxu1 }
 0x228   : > { %v1109_v46 = vadd.f32 %v2227_v44, %v2978_v11  ;;  %2300 = vmatprep.mubr.bf16.mxu0 %v1358_v41  ;;  %v1304_v53 = vmax.f32 %v1098_v45, 0.0 }
 0x229   : > { %v1100_v60 = vpop.f32.mrf.mxu1  ;;  %2301 = vmatmul.mubr.bf16.gmra.mxu0 %v1359_v43 }
 0x22a   : > { %v1101_v48 = vadd.f32 %v2978_v11, %v1100_v60  ;;  %v1307_v1 = vmax.f32 %v1109_v46, 0.0 }
 0x22b   : > { %v2230_v50 = vpop.f32.mrf.mxu1 }
 0x22c   : > { %v1305_v56 = vmax.f32 %v1101_v48, 0.0  ;;  %v1361_v61 = vpack.c.bf16 %v1307_v1, %v1306_v57  ;;  %v1122_v29 = vadd.f32 %v2230_v50, %v2978_v11 }
 0x22d   : > { %v1113_v58 = vpop.f32.mrf.mxu1 }
 0x22e   : > { %v1360_v52 = vpack.c.bf16 %v1305_v56, %v1304_v53  ;;  %v1114_v15 = vadd.f32 %v2978_v11, %v1113_v58  ;;  %v1310_v8 = vmax.f32 %v1122_v29, 0.0 }
 0x22f   : > { %v2231_v62 = vpop.f32.mrf.mxu1 }
 0x230   : > { %v1125_v33 = vadd.f32 %v2231_v62, %v2978_v11  ;;  %2304 = vmatprep.mubr.bf16.mxu0 %v1360_v52  ;;  %v1308_v3 = vmax.f32 %v1114_v15, 0.0 }
 0x231   : > { %v1116_v63 = vpop.f32.mrf.mxu1  ;;  %2305 = vmatmul.mubr.bf16.gmra.mxu0 %v1361_v61 }
 0x232   : > { %v1117_v47 = vadd.f32 %v2978_v11, %v1116_v63  ;;  %v1311_v0 = vmax.f32 %v1125_v33, 0.0 }
 0x233   : > { %v2234_v2 = vpop.f32.mrf.mxu1 }
 0x234   : > { %v1309_v7 = vmax.f32 %v1117_v47, 0.0  ;;  %v1363_v12 = vpack.c.bf16 %v1311_v0, %v1310_v8  ;;  %v1138_v5 = vadd.f32 %v2234_v2, %v2978_v11 }
 0x235   : > { %v1129_v9 = vpop.f32.mrf.mxu1 }
 0x236   : > { %v1362_v10 = vpack.c.bf16 %v1309_v7, %v1308_v3  ;;  %v1130_v13 = vadd.f32 %v2978_v11, %v1129_v9  ;;  %v1314_v19 = vmax.f32 %v1138_v5, 0.0 }
 0x237   : > { %v2235_v55 = vpop.f32.mrf.mxu1 }
 0x238   : > { %v1141_v51 = vadd.f32 %v2235_v55, %v2978_v11  ;;  %2308 = vmatprep.mubr.bf16.mxu0 %v1362_v10  ;;  %v1312_v17 = vmax.f32 %v1130_v13, 0.0 }
 0x239   : > { %v1132_v24 = vpop.f32.mrf.mxu1  ;;  %2309 = vmatmul.mubr.bf16.gmra.mxu0 %v1363_v12 }
 0x23a   : > { %v1133_v14 = vadd.f32 %v2978_v11, %v1132_v24  ;;  %v1315_v16 = vmax.f32 %v1141_v51, 0.0 }
 0x23b   : > { %v2238_v59 = vpop.f32.mrf.mxu1 }
 0x23c   : > { %v1313_v18 = vmax.f32 %v1133_v14, 0.0  ;;  %v1365_v23 = vpack.c.bf16 %v1315_v16, %v1314_v19  ;;  %v1154_v4 = vadd.f32 %v2238_v59, %v2978_v11 }
 0x23d   : > { %v1145_v21 = vpop.f32.mrf.mxu1 }
 0x23e   : > { %v1364_v22 = vpack.c.bf16 %v1313_v18, %v1312_v17  ;;  %v1146_v42 = vadd.f32 %v2978_v11, %v1145_v21  ;;  %v1318_v35 = vmax.f32 %v1154_v4, 0.0 }
 0x23f   : > { %v2239_v25 = vpop.f32.mrf.mxu1 }
 0x240   : > { %v1157_v26 = vadd.f32 %v2239_v25, %v2978_v11  ;;  %2312 = vmatprep.mubr.bf16.mxu0 %v1364_v22  ;;  %v1316_v34 = vmax.f32 %v1146_v42, 0.0 }
 0x241   : > { %v1148_v27 = vpop.f32.mrf.mxu1  ;;  %2313 = vmatmul.mubr.bf16.gmra.mxu0 %v1365_v23 }
 0x242   : > { %v1149_v30 = vadd.f32 %v2978_v11, %v1148_v27  ;;  %v1319_v31 = vmax.f32 %v1157_v26, 0.0 }
 0x243   : > { %v2242_v32 = vpop.f32.mrf.mxu1 }
 0x244   : > { %v1317_v6 = vmax.f32 %v1149_v30, 0.0  ;;  %v1367_v36 = vpack.c.bf16 %v1319_v31, %v1318_v35  ;;  %v1170_v39 = vadd.f32 %v2242_v32, %v2978_v11 }
 0x245   : > { %v1161_v20 = vpop.f32.mrf.mxu1 }
 0x246   : > { %v1366_v49 = vpack.c.bf16 %v1317_v6, %v1316_v34  ;;  %v1162_v54 = vadd.f32 %v2978_v11, %v1161_v20  ;;  %v1322_v38 = vmax.f32 %v1170_v39, 0.0 }
 0x247   : > { %v2243_v28 = vpop.f32.mrf.mxu1 }
 0x248   : > { %v1173_v37 = vadd.f32 %v2243_v28, %v2978_v11  ;;  %2316 = vmatprep.mubr.bf16.mxu0 %v1366_v49  ;;  %v1320_v45 = vmax.f32 %v1162_v54, 0.0 }
 0x249   : > { %v1164_v40 = vpop.f32.mrf.mxu1  ;;  %2317 = vmatmul.mubr.bf16.gmra.mxu0 %v1367_v36 }
 0x24a   : > { %v1165_v41 = vadd.f32 %v2978_v11, %v1164_v40  ;;  %v1323_v43 = vmax.f32 %v1173_v37, 0.0 }
 0x24b   : > { %v2246_v44 = vpop.f32.mrf.mxu1 }
 0x24c   : > { %v1321_v46 = vmax.f32 %v1165_v41, 0.0  ;;  %v1369_v1 = vpack.c.bf16 %v1323_v43, %v1322_v38  ;;  %v1186_v57 = vadd.f32 %v2246_v44, %v2978_v11 }
 0x24d   : > { %v1177_v60 = vpop.f32.mrf.mxu1 }
 0x24e   : > { %v1368_v48 = vpack.c.bf16 %v1321_v46, %v1320_v45  ;;  %v1178_v53 = vadd.f32 %v2978_v11, %v1177_v60  ;;  %v1326_v29 = vmax.f32 %v1186_v57, 0.0 }
 0x24f   : > { %v2247_v50 = vpop.f32.mrf.mxu1 }
 0x250   : > { %v1189_v56 = vadd.f32 %v2247_v50, %v2978_v11  ;;  %2320 = vmatprep.mubr.bf16.mxu0 %v1368_v48  ;;  %v1324_v15 = vmax.f32 %v1178_v53, 0.0 }
 0x251   : > { %v1180_v58 = vpop.f32.mrf.mxu1  ;;  %2321 = vmatmul.mubr.bf16.gmra.mxu0 %v1369_v1 }
 0x252   : > { %v1181_v52 = vadd.f32 %v2978_v11, %v1180_v58  ;;  %v1327_v61 = vmax.f32 %v1189_v56, 0.0 }
 0x253   : > { %v2250_v62 = vpop.f32.mrf.mxu1 }
 0x254   : > { %v1325_v33 = vmax.f32 %v1181_v52, 0.0  ;;  %v1371_v0 = vpack.c.bf16 %v1327_v61, %v1326_v29  ;;  %v1202_v8 = vadd.f32 %v2250_v62, %v2978_v11 }
 0x255   : > { %v1193_v63 = vpop.f32.mrf.mxu1 }
 0x256   : > { %v1370_v47 = vpack.c.bf16 %v1325_v33, %v1324_v15  ;;  %v1194_v3 = vadd.f32 %v2978_v11, %v1193_v63  ;;  %v1330_v5 = vmax.f32 %v1202_v8, 0.0 }
 0x257   : > { %v2251_v2 = vpop.f32.mrf.mxu1 }
 0x258   : > { %v1205_v7 = vadd.f32 %v2251_v2, %v2978_v11  ;;  %2324 = vmatprep.mubr.bf16.mxu0 %v1370_v47  ;;  %v1328_v13 = vmax.f32 %v1194_v3, 0.0 }
 0x259   : > { %v1196_v9 = vpop.f32.mrf.mxu1  ;;  %2325 = vmatmul.mubr.bf16.gmra.mxu0 %v1371_v0 }
 0x25a   : > { %v1197_v10 = vadd.f32 %v2978_v11, %v1196_v9  ;;  %v1331_v12 = vmax.f32 %v1205_v7, 0.0 }
 0x25b   : > { %v2254_v55 = vpop.f32.mrf.mxu1 }
 0x25c   : > { %v1329_v51 = vmax.f32 %v1197_v10, 0.0  ;;  %v1373_v16 = vpack.c.bf16 %v1331_v12, %v1330_v5  ;;  %v1218_v19 = vadd.f32 %v2254_v55, %v2978_v11 }
 0x25d   : > { %v1209_v24 = vpop.f32.mrf.mxu1 }
 0x25e   : > { %v1372_v14 = vpack.c.bf16 %v1329_v51, %v1328_v13  ;;  %v1210_v17 = vadd.f32 %v2978_v11, %v1209_v24  ;;  %v1334_v4 = vmax.f32 %v1218_v19, 0.0 }
 0x25f   : > { %v2255_v59 = vpop.f32.mrf.mxu1 }
 0x260   : > { %v1221_v18 = vadd.f32 %v2255_v59, %v2978_v11  ;;  %2328 = vmatprep.mubr.bf16.mxu0 %v1372_v14  ;;  %v1332_v42 = vmax.f32 %v1210_v17, 0.0 }
 0x261   : > { %v1212_v21 = vpop.f32.mrf.mxu1  ;;  %2329 = vmatmul.mubr.bf16.gmra.mxu0 %v1373_v16 }
 0x262   : > { %v1213_v22 = vadd.f32 %v2978_v11, %v1212_v21  ;;  %v1335_v23 = vmax.f32 %v1221_v18, 0.0 }
 0x263   : > { %v2258_v25 = vpop.f32.mrf.mxu1 }
 0x264   : > { %v1333_v26 = vmax.f32 %v1213_v22, 0.0  ;;  %v1375_v31 = vpack.c.bf16 %v1335_v23, %v1334_v4  ;;  %v1234_v35 = vadd.f32 %v2258_v25, %v2978_v11  ;;  %v3045_v22 = vld [vmem:[#allocation7 + $0x2] ss:$0 sm:$0xff] }
 0x265   : > { %v1225_v27 = vpop.f32.mrf.mxu1 }
 0x266   : > { %v1374_v30 = vpack.c.bf16 %v1333_v26, %v1332_v42  ;;  %v1226_v34 = vadd.f32 %v2978_v11, %v1225_v27  ;;  %v1338_v39 = vmax.f32 %v1234_v35, 0.0 }
 0x267   : > { %v2259_v32 = vpop.f32.mrf.mxu1 }
 0x268   : > { %v1237_v6 = vadd.f32 %v2259_v32, %v2978_v11  ;;  %2332 = vmatprep.mubr.bf16.mxu0 %v1374_v30  ;;  %v1336_v54 = vmax.f32 %v1226_v34, 0.0 }
 0x269   : > { %v1228_v20 = vpop.f32.mrf.mxu1  ;;  %2333 = vmatmul.mubr.bf16.gmra.mxu0 %v1375_v31 }
 0x26a   : > { %v1229_v49 = vadd.f32 %v2978_v11, %v1228_v20  ;;  %v1339_v36 = vmax.f32 %v1237_v6, 0.0 }
 0x26b   : > { %v2262_v28 = vpop.f32.mrf.mxu1 }
 0x26c   : > { %v1337_v37 = vmax.f32 %v1229_v49, 0.0  ;;  %v1377_v43 = vpack.c.bf16 %v1339_v36, %v1338_v39  ;;  %v1250_v38 = vadd.f32 %v2262_v28, %v2978_v11 }
 0x26d   : > { %v1241_v40 = vpop.f32.mrf.mxu1 }
 0x26e   : > { %v1376_v41 = vpack.c.bf16 %v1337_v37, %v1336_v54  ;;  %v1242_v45 = vadd.f32 %v2978_v11, %v1241_v40  ;;  %v1342_v57 = vmax.f32 %v1250_v38, 0.0 }
 0x26f   : > { %v2263_v44 = vpop.f32.mrf.mxu1 }
 0x270   : > { %v1253_v46 = vadd.f32 %v2263_v44, %v2978_v11  ;;  %2336 = vmatprep.mubr.bf16.mxu0 %v1376_v41  ;;  %v1340_v53 = vmax.f32 %v1242_v45, 0.0 }
 0x271   : > { %v1244_v60 = vpop.f32.mrf.mxu1  ;;  %2337 = vmatmul.mubr.bf16.gmra.mxu0 %v1377_v43 }
 0x272   : > { %v1245_v48 = vadd.f32 %v2978_v11, %v1244_v60  ;;  %v1343_v1 = vmax.f32 %v1253_v46, 0.0 }
 0x273   : > { %v2266_v50 = vpop.f32.mrf.mxu1 }
 0x274   : > { %v1341_v56 = vmax.f32 %v1245_v48, 0.0  ;;  %v1379_v61 = vpack.c.bf16 %v1343_v1, %v1342_v57  ;;  %v1266_v29 = vadd.f32 %v2266_v50, %v2978_v11 }
 0x275   : > { %v1257_v58 = vpop.f32.mrf.mxu1 }
 0x276   : > { %v1378_v52 = vpack.c.bf16 %v1341_v56, %v1340_v53  ;;  %v1258_v15 = vadd.f32 %v2978_v11, %v1257_v58  ;;  %v1346_v8 = vmax.f32 %v1266_v29, 0.0 }
 0x277   : > { %v2267_v62 = vpop.f32.mrf.mxu1 }
 0x278   : > { %v1269_v33 = vadd.f32 %v2267_v62, %v2978_v11  ;;  %2340 = vmatprep.mubr.bf16.mxu0 %v1378_v52  ;;  %v1344_v3 = vmax.f32 %v1258_v15, 0.0 }
 0x279   : > { %v1260_v63 = vpop.f32.mrf.mxu1  ;;  %2341 = vmatmul.mubr.bf16.gmra.mxu0 %v1379_v61 }
 0x27a   : > { %v1261_v47 = vadd.f32 %v2978_v11, %v1260_v63  ;;  %v1347_v0 = vmax.f32 %v1269_v33, 0.0 }
 0x27b   : > { %v2270_v2 = vpop.f32.mrf.mxu1 }
 0x27c   : > { %v1345_v7 = vmax.f32 %v1261_v47, 0.0  ;;  %v1381_v12 = vpack.c.bf16 %v1347_v0, %v1346_v8  ;;  %v1282_v5 = vadd.f32 %v2270_v2, %v2978_v11 }
 0x27d   : > { %v1273_v9 = vpop.f32.mrf.mxu1 }
 0x27e   : > { %v1380_v10 = vpack.c.bf16 %v1345_v7, %v1344_v3  ;;  %v1274_v13 = vadd.f32 %v2978_v11, %v1273_v9  ;;  %v1350_v18 = vmax.f32 %v1282_v5, 0.0 }
 0x27f   : > { %v2271_v55 = vpop.f32.mrf.mxu1 }
 0x280   : > { %v1285_v51 = vadd.f32 %v2271_v55, %v2978_v11  ;;  %2344 = vmatprep.mubr.bf16.mxu0 %v1380_v10  ;;  %v1348_v59 = vmax.f32 %v1274_v13, 0.0 }
 0x281   : > { %v1276_v24 = vpop.f32.mrf.mxu1  ;;  %2345 = vmatmul.mubr.bf16.gmra.mxu0 %v1381_v12 }
 0x282   : > { %v1277_v14 = vadd.f32 %v2978_v11, %v1276_v24  ;;  %v1351_v16 = vmax.f32 %v1285_v51, 0.0 }
 0x284   : > { %v1349_v17 = vmax.f32 %v1277_v14, 0.0  ;;  %v1383_v21 = vpack.c.bf16 %v1351_v16, %v1350_v18 }
 0x286   : > { %v1382_v19 = vpack.c.bf16 %v1349_v17, %v1348_v59 }
 0x288   : > { %2348 = vmatprep.mubr.bf16.mxu0 %v1382_v19 }
 0x289   : > { %2349 = vmatmul.mubr.bf16.gmra.mxu0 %v1383_v21 }
 0x2d1   : > { %v2290_v23 = vpop.f32.mrf.mxu0 }
 0x2d2   : > { %v1497_v25 = vadd.f32 %v2290_v23, %v3045_v22 }
 0x2d3   : > { %v1488_v42 = vpop.f32.mrf.mxu0 }
 0x2d4   : > { %1745 = vst [vmem:[%s3048_s20 + $0x10] sm:$0xff] %v1497_v25  ;;  %v1489_v11 = vadd.f32 %v3045_v22, %v1488_v42 }
 0x2d5   : > { %v2291_v26 = vpop.f32.mrf.mxu0 }
 0x2d6   : > { %1743 = vst [vmem:[%s3048_s20] sm:$0xff] %v1489_v11  ;;  %v1500_v4 = vadd.f32 %v2291_v26, %v3045_v22 }
 0x2d7   : > { %v1491_v27 = vpop.f32.mrf.mxu0 }
 0x2d8   : > { %1746 = vst [vmem:[%s3048_s20 + $0x18] sm:$0xff] %v1500_v4  ;;  %v1492_v30 = vadd.f32 %v3045_v22, %v1491_v27 }
 0x2d9   : > { %v2294_v31 = vpop.f32.mrf.mxu0 }
 0x2da   : > { %1744 = vst [vmem:[%s3048_s20 + $0x8] sm:$0xff] %v1492_v30  ;;  %v1513_v32 = vadd.f32 %v2294_v31, %v3045_v22 }
 0x2db   : > { %v1504_v34 = vpop.f32.mrf.mxu0 }
 0x2dc   : > { %1749 = vst [vmem:[%s3048_s20 + $0x30] sm:$0xff] %v1513_v32  ;;  %v1505_v6 = vadd.f32 %v3045_v22, %v1504_v34 }
 0x2dd   : > { %v2295_v35 = vpop.f32.mrf.mxu0 }
 0x2de   : > { %1747 = vst [vmem:[%s3048_s20 + $0x20] sm:$0xff] %v1505_v6  ;;  %v1516_v20 = vadd.f32 %v2295_v35, %v3045_v22 }
 0x2df   : > { %v1507_v49 = vpop.f32.mrf.mxu0 }
 0x2e0   : > { %1750 = vst [vmem:[%s3048_s20 + $0x38] sm:$0xff] %v1516_v20  ;;  %v1508_v36 = vadd.f32 %v3045_v22, %v1507_v49 }
 0x2e1   : > { %v2298_v28 = vpop.f32.mrf.mxu0 }
 0x2e2   : > { %1748 = vst [vmem:[%s3048_s20 + $0x28] sm:$0xff] %v1508_v36  ;;  %v1529_v54 = vadd.f32 %v2298_v28, %v3045_v22 }
 0x2e3   : > { %v1520_v37 = vpop.f32.mrf.mxu0 }
 0x2e4   : > { %1753 = vst [vmem:[%s3048_s20 + $0x50] sm:$0xff] %v1529_v54  ;;  %v1521_v39 = vadd.f32 %v3045_v22, %v1520_v37 }
 0x2e5   : > { %v2299_v40 = vpop.f32.mrf.mxu0 }
 0x2e6   : > { %1751 = vst [vmem:[%s3048_s20 + $0x40] sm:$0xff] %v1521_v39  ;;  %v1532_v41 = vadd.f32 %v2299_v40, %v3045_v22 }
 0x2e7   : > { %v1523_v43 = vpop.f32.mrf.mxu0 }
 0x2e8   : > { %1754 = vst [vmem:[%s3048_s20 + $0x58] sm:$0xff] %v1532_v41  ;;  %v1524_v44 = vadd.f32 %v3045_v22, %v1523_v43 }
 0x2e9   : > { %v2302_v45 = vpop.f32.mrf.mxu0 }
 0x2ea   : > { %1752 = vst [vmem:[%s3048_s20 + $0x48] sm:$0xff] %v1524_v44  ;;  %v1545_v46 = vadd.f32 %v2302_v45, %v3045_v22 }
 0x2eb   : > { %v1536_v38 = vpop.f32.mrf.mxu0 }
 0x2ec   : > { %1757 = vst [vmem:[%s3048_s20 + $0x70] sm:$0xff] %v1545_v46  ;;  %v1537_v60 = vadd.f32 %v3045_v22, %v1536_v38 }
 0x2ed   : > { %v2303_v48 = vpop.f32.mrf.mxu0 }
 0x2ee   : > { %1755 = vst [vmem:[%s3048_s20 + $0x60] sm:$0xff] %v1537_v60  ;;  %v1548_v1 = vadd.f32 %v2303_v48, %v3045_v22 }
 0x2ef   : > { %v1539_v50 = vpop.f32.mrf.mxu0 }
 0x2f0   : > { %1758 = vst [vmem:[%s3048_s20 + $0x78] sm:$0xff] %v1548_v1  ;;  %v1540_v53 = vadd.f32 %v3045_v22, %v1539_v50 }
 0x2f1   : > { %v2306_v56 = vpop.f32.mrf.mxu0 }
 0x2f2   : > { %1756 = vst [vmem:[%s3048_s20 + $0x68] sm:$0xff] %v1540_v53  ;;  %v1561_v57 = vadd.f32 %v2306_v56, %v3045_v22 }
 0x2f3   : > { %v1552_v58 = vpop.f32.mrf.mxu0 }
 0x2f4   : > { %1761 = vst [vmem:[%s3048_s20 + $0x90] sm:$0xff] %v1561_v57  ;;  %v1553_v52 = vadd.f32 %v3045_v22, %v1552_v58 }
 0x2f5   : > { %v2307_v61 = vpop.f32.mrf.mxu0 }
 0x2f6   : > { %1759 = vst [vmem:[%s3048_s20 + $0x80] sm:$0xff] %v1553_v52  ;;  %v1564_v62 = vadd.f32 %v2307_v61, %v3045_v22 }
 0x2f7   : > { %v1555_v15 = vpop.f32.mrf.mxu0 }
 0x2f8   : > { %1762 = vst [vmem:[%s3048_s20 + $0x98] sm:$0xff] %v1564_v62  ;;  %v1556_v33 = vadd.f32 %v3045_v22, %v1555_v15 }
 0x2f9   : > { %v2310_v29 = vpop.f32.mrf.mxu0 }
 0x2fa   : > { %1760 = vst [vmem:[%s3048_s20 + $0x88] sm:$0xff] %v1556_v33  ;;  %v1577_v63 = vadd.f32 %v2310_v29, %v3045_v22 }
 0x2fb   : > { %v1568_v47 = vpop.f32.mrf.mxu0 }
 0x2fc   : > { %1765 = vst [vmem:[%s3048_s20 + $0xb0] sm:$0xff] %v1577_v63  ;;  %v1569_v0 = vadd.f32 %v3045_v22, %v1568_v47 }
 0x2fd   : > { %v2311_v2 = vpop.f32.mrf.mxu0 }
 0x2fe   : > { %1763 = vst [vmem:[%s3048_s20 + $0xa0] sm:$0xff] %v1569_v0  ;;  %v1580_v3 = vadd.f32 %v2311_v2, %v3045_v22 }
 0x2ff   : > { %v1571_v7 = vpop.f32.mrf.mxu0 }
 0x300   : > { %1766 = vst [vmem:[%s3048_s20 + $0xb8] sm:$0xff] %v1580_v3  ;;  %v1572_v8 = vadd.f32 %v3045_v22, %v1571_v7 }
 0x301   : > { %v2314_v9 = vpop.f32.mrf.mxu0 }
 0x302   : > { %1764 = vst [vmem:[%s3048_s20 + $0xa8] sm:$0xff] %v1572_v8  ;;  %v1593_v10 = vadd.f32 %v2314_v9, %v3045_v22 }
 0x303   : > { %v1584_v12 = vpop.f32.mrf.mxu0 }
 0x304   : > { %1769 = vst [vmem:[%s3048_s20 + $0xd0] sm:$0xff] %v1593_v10  ;;  %v1585_v55 = vadd.f32 %v3045_v22, %v1584_v12 }
 0x305   : > { %v2315_v13 = vpop.f32.mrf.mxu0 }
 0x306   : > { %1767 = vst [vmem:[%s3048_s20 + $0xc0] sm:$0xff] %v1585_v55  ;;  %v1596_v51 = vadd.f32 %v2315_v13, %v3045_v22 }
 0x307   : > { %v1587_v5 = vpop.f32.mrf.mxu0 }
 0x308   : > { %1770 = vst [vmem:[%s3048_s20 + $0xd8] sm:$0xff] %v1596_v51  ;;  %v1588_v24 = vadd.f32 %v3045_v22, %v1587_v5 }
 0x309   : > { %v2318_v14 = vpop.f32.mrf.mxu0 }
 0x30a   : > { %1768 = vst [vmem:[%s3048_s20 + $0xc8] sm:$0xff] %v1588_v24  ;;  %v1609_v16 = vadd.f32 %v2318_v14, %v3045_v22 }
 0x30b   : > { %v1600_v59 = vpop.f32.mrf.mxu0 }
 0x30c   : > { %1773 = vst [vmem:[%s3048_s20 + $0xf0] sm:$0xff] %v1609_v16  ;;  %v1601_v17 = vadd.f32 %v3045_v22, %v1600_v59 }
 0x30d   : > { %v2319_v18 = vpop.f32.mrf.mxu0 }
 0x30e   : > { %1771 = vst [vmem:[%s3048_s20 + $0xe0] sm:$0xff] %v1601_v17  ;;  %v1612_v19 = vadd.f32 %v2319_v18, %v3045_v22 }
 0x30f   : > { %v1603_v21 = vpop.f32.mrf.mxu0 }
 0x310   : > { %1774 = vst [vmem:[%s3048_s20 + $0xf8] sm:$0xff] %v1612_v19  ;;  %v1604_v23 = vadd.f32 %v3045_v22, %v1603_v21 }
 0x311   : > { %v2322_v25 = vpop.f32.mrf.mxu0 }
 0x312   : > { %1772 = vst [vmem:[%s3048_s20 + $0xe8] sm:$0xff] %v1604_v23  ;;  %v1625_v42 = vadd.f32 %v2322_v25, %v3045_v22 }
 0x313   : > { %v1616_v11 = vpop.f32.mrf.mxu0 }
 0x314   : > { %1777 = vst [vmem:[%s3048_s20 + $0x110] sm:$0xff] %v1625_v42  ;;  %v1617_v26 = vadd.f32 %v3045_v22, %v1616_v11 }
 0x315   : > { %v2323_v4 = vpop.f32.mrf.mxu0 }
 0x316   : > { %1775 = vst [vmem:[%s3048_s20 + $0x100] sm:$0xff] %v1617_v26  ;;  %v1628_v27 = vadd.f32 %v2323_v4, %v3045_v22 }
 0x317   : > { %v1619_v30 = vpop.f32.mrf.mxu0 }
 0x318   : > { %1778 = vst [vmem:[%s3048_s20 + $0x118] sm:$0xff] %v1628_v27  ;;  %v1620_v31 = vadd.f32 %v3045_v22, %v1619_v30 }
 0x319   : > { %v2326_v32 = vpop.f32.mrf.mxu0 }
 0x31a   : > { %1776 = vst [vmem:[%s3048_s20 + $0x108] sm:$0xff] %v1620_v31  ;;  %v1641_v34 = vadd.f32 %v2326_v32, %v3045_v22 }
 0x31b   : > { %v1632_v6 = vpop.f32.mrf.mxu0 }
 0x31c   : > { %1781 = vst [vmem:[%s3048_s20 + $0x130] sm:$0xff] %v1641_v34  ;;  %v1633_v35 = vadd.f32 %v3045_v22, %v1632_v6 }
 0x31d   : > { %v2327_v20 = vpop.f32.mrf.mxu0 }
 0x31e   : > { %1779 = vst [vmem:[%s3048_s20 + $0x120] sm:$0xff] %v1633_v35  ;;  %v1644_v49 = vadd.f32 %v2327_v20, %v3045_v22 }
 0x31f   : > { %v1635_v36 = vpop.f32.mrf.mxu0 }
 0x320   : > { %1782 = vst [vmem:[%s3048_s20 + $0x138] sm:$0xff] %v1644_v49  ;;  %v1636_v28 = vadd.f32 %v3045_v22, %v1635_v36 }
 0x321   : > { %v2330_v54 = vpop.f32.mrf.mxu0 }
 0x322   : > { %1780 = vst [vmem:[%s3048_s20 + $0x128] sm:$0xff] %v1636_v28  ;;  %v1657_v37 = vadd.f32 %v2330_v54, %v3045_v22 }
 0x323   : > { %v1648_v39 = vpop.f32.mrf.mxu0 }
 0x324   : > { %1785 = vst [vmem:[%s3048_s20 + $0x150] sm:$0xff] %v1657_v37  ;;  %v1649_v40 = vadd.f32 %v3045_v22, %v1648_v39 }
 0x325   : > { %v2331_v41 = vpop.f32.mrf.mxu0 }
 0x326   : > { %1783 = vst [vmem:[%s3048_s20 + $0x140] sm:$0xff] %v1649_v40  ;;  %v1660_v43 = vadd.f32 %v2331_v41, %v3045_v22 }
 0x327   : > { %v1651_v44 = vpop.f32.mrf.mxu0 }
 0x328   : > { %1786 = vst [vmem:[%s3048_s20 + $0x158] sm:$0xff] %v1660_v43  ;;  %v1652_v45 = vadd.f32 %v3045_v22, %v1651_v44 }
 0x329   : > { %v2334_v46 = vpop.f32.mrf.mxu0 }
 0x32a   : > { %1784 = vst [vmem:[%s3048_s20 + $0x148] sm:$0xff] %v1652_v45  ;;  %v1673_v38 = vadd.f32 %v2334_v46, %v3045_v22 }
 0x32b   : > { %v1664_v60 = vpop.f32.mrf.mxu0 }
 0x32c   : > { %1789 = vst [vmem:[%s3048_s20 + $0x170] sm:$0xff] %v1673_v38  ;;  %v1665_v48 = vadd.f32 %v3045_v22, %v1664_v60 }
 0x32d   : > { %v2335_v1 = vpop.f32.mrf.mxu0 }
 0x32e   : > { %1787 = vst [vmem:[%s3048_s20 + $0x160] sm:$0xff] %v1665_v48  ;;  %v1676_v50 = vadd.f32 %v2335_v1, %v3045_v22 }
 0x32f   : > { %v1667_v53 = vpop.f32.mrf.mxu0 }
 0x330   : > { %1790 = vst [vmem:[%s3048_s20 + $0x178] sm:$0xff] %v1676_v50  ;;  %v1668_v56 = vadd.f32 %v3045_v22, %v1667_v53 }
 0x331   : > { %v2338_v57 = vpop.f32.mrf.mxu0 }
 0x332   : > { %1788 = vst [vmem:[%s3048_s20 + $0x168] sm:$0xff] %v1668_v56  ;;  %v1689_v58 = vadd.f32 %v2338_v57, %v3045_v22 }
 0x333   : > { %v1680_v52 = vpop.f32.mrf.mxu0 }
 0x334   : > { %1793 = vst [vmem:[%s3048_s20 + $0x190] sm:$0xff] %v1689_v58  ;;  %v1681_v61 = vadd.f32 %v3045_v22, %v1680_v52 }
 0x335   : > { %v2339_v62 = vpop.f32.mrf.mxu0 }
 0x336   : > { %1791 = vst [vmem:[%s3048_s20 + $0x180] sm:$0xff] %v1681_v61  ;;  %v1692_v15 = vadd.f32 %v2339_v62, %v3045_v22 }
 0x337   : > { %v1683_v33 = vpop.f32.mrf.mxu0 }
 0x338   : > { %1794 = vst [vmem:[%s3048_s20 + $0x198] sm:$0xff] %v1692_v15  ;;  %v1684_v29 = vadd.f32 %v3045_v22, %v1683_v33 }
 0x339   : > { %v2342_v63 = vpop.f32.mrf.mxu0 }
 0x33a   : > { %1792 = vst [vmem:[%s3048_s20 + $0x188] sm:$0xff] %v1684_v29  ;;  %v1705_v47 = vadd.f32 %v2342_v63, %v3045_v22 }
 0x33b   : > { %v1696_v0 = vpop.f32.mrf.mxu0 }
 0x33c   : > { %1797 = vst [vmem:[%s3048_s20 + $0x1b0] sm:$0xff] %v1705_v47  ;;  %v1697_v2 = vadd.f32 %v3045_v22, %v1696_v0 }
 0x33d   : > { %v2343_v3 = vpop.f32.mrf.mxu0 }
 0x33e   : > { %1795 = vst [vmem:[%s3048_s20 + $0x1a0] sm:$0xff] %v1697_v2  ;;  %v1708_v7 = vadd.f32 %v2343_v3, %v3045_v22 }
 0x33f   : > { %v1699_v8 = vpop.f32.mrf.mxu0 }
 0x340   : > { %1798 = vst [vmem:[%s3048_s20 + $0x1b8] sm:$0xff] %v1708_v7  ;;  %v1700_v9 = vadd.f32 %v3045_v22, %v1699_v8 }
 0x341   : > { %v2346_v10 = vpop.f32.mrf.mxu0 }
 0x342   : > { %1796 = vst [vmem:[%s3048_s20 + $0x1a8] sm:$0xff] %v1700_v9  ;;  %v1721_v12 = vadd.f32 %v2346_v10, %v3045_v22 }
 0x343   : > { %v1712_v55 = vpop.f32.mrf.mxu0 }
 0x344   : > { %1801 = vst [vmem:[%s3048_s20 + $0x1d0] sm:$0xff] %v1721_v12  ;;  %v1713_v13 = vadd.f32 %v3045_v22, %v1712_v55 }
 0x345   : > { %v2347_v51 = vpop.f32.mrf.mxu0 }
 0x346   : > { %1799 = vst [vmem:[%s3048_s20 + $0x1c0] sm:$0xff] %v1713_v13  ;;  %v1724_v5 = vadd.f32 %v2347_v51, %v3045_v22 }
 0x347   : > { %v1715_v24 = vpop.f32.mrf.mxu0 }
 0x348   : > { %1802 = vst [vmem:[%s3048_s20 + $0x1d8] sm:$0xff] %v1724_v5  ;;  %v1716_v14 = vadd.f32 %v3045_v22, %v1715_v24 }
 0x349   : > { %v2350_v16 = vpop.f32.mrf.mxu0 }
 0x34a   : > { %1800 = vst [vmem:[%s3048_s20 + $0x1c8] sm:$0xff] %v1716_v14  ;;  %v1737_v59 = vadd.f32 %v2350_v16, %v3045_v22 }
 0x34b   : > { %v1728_v17 = vpop.f32.mrf.mxu0 }
 0x34c   : > { %1805 = vst [vmem:[%s3048_s20 + $0x1f0] sm:$0xff] %v1737_v59  ;;  %v1729_v18 = vadd.f32 %v3045_v22, %v1728_v17 }
 0x34d   : > { %v2351_v19 = vpop.f32.mrf.mxu0 }
 0x34e   : > { %1803 = vst [vmem:[%s3048_s20 + $0x1e0] sm:$0xff] %v1729_v18  ;;  %v1740_v21 = vadd.f32 %v2351_v19, %v3045_v22 }
 0x34f   : > { %v1731_v23 = vpop.f32.mrf.mxu0 }
 0x350   : > { %1806 = vst [vmem:[%s3048_s20 + $0x1f8] sm:$0xff] %v1740_v21  ;;  %v1732_v25 = vadd.f32 %v3045_v22, %v1731_v23 }
 0x352   : > { %1804 = vst [vmem:[%s3048_s20 + $0x1e8] sm:$0xff] %v1732_v25 }
 0x353   : > { %2588 = shalt.err (!%p2585_p3)
}
 0x354   : > { %s2589_s23 = scalar_lea.hbm %s3179_s30, 8192  ;;  %s2593_s6 = scalar_lea.hbm %s3230_s3, 16384 }
 0x355   : > { %p2590_p11 = scmp.ne.s32.totalorder %s3179_s30, %s2589_s23  ;;  %p2594_p4 = scmp.lt.s32.totalorder %s3179_s30, %s3230_s3 }
 0x356   : > { %p2595_p6 = scmp.lt.s32.totalorder %s2593_s6, %s2589_s23 }
 0x357   : > { %p2591_p9 = pnand %p2590_p11, %p3245_p2 }
 0x358   : > { %p2596_p8 = por %p2595_p6, %p2594_p4 }
 0x359   : > { %p2592_p1 = pneg %p2591_p9 }
 0x35b   : > { %p2597_p5 = pnand %p2596_p8, %p2592_p1 }
 0x35d   : > { %2600 = shalt.err (!%p2597_p5)
}
 0x35e   : > { %s2651_s18 = smov 128   ;;  %s2652_s20 = smov 8  }
 0x35f   : > { %2378 = dma.vmem_to_hbm [thread:$0]  (%p3245_p2), %s3181_s28, 8192, %s3179_s30, %s1808_s16, %s2651_s18, %s2651_s18, %s2652_s20  }
 0x360 PF: > { %s1836_s27 = sand.u32 1, %s2631_s12   ;;  %p3246_p7 = scmp.ne.s32.totalorder %s3236_s19, 0 }
 0x361   : > { %p3247_p12 = scmp.ge.s32.totalorder %s2643_s15, 2  ;;  %s1837_s25 = scalar_lea.sflag [#allocation4], %s1836_s27 }
 0x363   : > { %p2392_p13 = pnand %p3247_p12, %p3246_p7 }
 0x365   : > { %p2393_p0 = pneg %p2392_p13 }
 0x367   : > { %2626 = dma.done.wait (%p2393_p0), %s1837_s25, 8192  }
 0x368   : > { %2628 = vsyncadd (%p2393_p0), %s1837_s25, 4294959104  ;;  %p17_p10 = scmp.ge.s32.totalorder %s2748_s7, 4   ;;  %s3248_s12 = smov %s2635_s13 }
 0x369   : > { %s3249_s13 = smov %s2639_s14  ;;  %s3250_s14 = smov %s2764_s11 }
 0x36a   : > { %s3251_s15 = smov %s2748_s7  ;;  %19 = sbr.rel (!%p17_p10) target bundleno = 6 (0x6), region = 87 }
 0x36f   :  { %1842 = vsyncpa [#allocation3], 1 }
 0x370   :  { %1844 = vsyncpa [#allocation3 + $0x1], 1 }
 0x371   :  { %1845 = vsyncpa [#allocation6], 1 }
 0x372   :  { %1846 = vsyncpa [#allocation4], 1 }
 0x373   :  { %1848 = vsyncpa [#allocation4 + $0x1], 1 }

</bundles_post_ra>
